<compile_context>
chip_gen: v6e
topology: v6e:2x2x1
jax: 0.10.0
libtpu: 0.0.40
codegen_flags: <defaults>
</compile_context>

<pallas_src>
import functools

import jax
import jax.numpy as jnp
from jax.experimental import pallas as pl
from jax.experimental.pallas import tpu as pltpu


def _conv_shuffle_prelu_kernel(x_ref, w_ref, mask_ref, alpha_ref, o_ref,
                               xe_ref, patches_ref, *, H, W, r, pad, fuse):
    """Fused 3x3 SAME conv + bias + PReLU (+ PixelShuffle store) for B images.

    x_ref:       (B, Cin, H*W)            unpadded images, row-major flattened
    w_ref:       (Cout, K_tot)            col (t*Cin + cin) = tap t weight, col 9*Cin = bias
    mask_ref:    (9, B*H*W)               tap validity masks (1 = in-bounds neighbor)
    alpha_ref:   (1,)  SMEM               shared PReLU slope
    o_ref:       fuse: (B, Cin, H*r, W*r)   else: (B, Cin*r*r, H*W)
    xe_ref:      (Cin, B*H*W + 2*pad)     halo-extended, lane-concatenated images
    patches_ref: (K_tot, B*H*W)           folded im2col matrix (+ ones rows)
    """
    B, Cin, HW = x_ref.shape
    BHW = B * HW
    cdt = xe_ref.dtype
    n_w_rows = 9 * Cin
    K_tot = patches_ref.shape[0]

    # ---- per-step init (tiny; unconditional because the grid axis is "parallel") ----
    xe_ref[:, :pad] = jnp.zeros((Cin, pad), cdt)
    xe_ref[:, pad + BHW:] = jnp.zeros((Cin, pad), cdt)
    patches_ref[n_w_rows:, :] = jnp.ones((K_tot - n_w_rows, BHW), cdt)   # bias row + K pad

    # ---- load images into the halo-extended lane-concatenated buffer ----
    for b in range(B):
        xe_ref[:, pad + b * HW:pad + (b + 1) * HW] = x_ref[b].astype(cdt)

    # ---- folded im2col: tap (dy, dx) is a static lane shift + precomputed edge mask ----
    taps = [(dy, dx) for dy in (-1, 0, 1) for dx in (-1, 0, 1)]
    for t, (dy, dx) in enumerate(taps):
        start = pad + dy * W + dx
        tap = xe_ref[:, start:start + BHW]                      # (Cin, B*HW)
        if (dy, dx) != (0, 0):
            tap = tap * mask_ref[t:t + 1, :]                    # zero out-of-image neighbors
        patches_ref[t * Cin:(t + 1) * Cin, :] = tap

    # ---- one MXU matmul, bias folded in; PReLU in f32 ----
    y = jnp.dot(w_ref[...], patches_ref[...],
                preferred_element_type=jnp.float32)             # (Cout, B*HW) f32
    alpha = alpha_ref[0]
    y = jnp.where(y >= 0, y, alpha * y)
    y = y.astype(o_ref.dtype)

    if fuse:
        # PixelShuffle fused into the store: matmul row (i*r+j)*Cin + c goes to output
        # channel c, spatial (h*r+i, w*r+j)  ->  lane-strided stores, no HBM round trip.
        for b in range(B):
            base = b * HW
            for g in range(r * r):
                i, j = g // r, g % r
                rows = y[g * Cin:(g + 1) * Cin]                 # (Cin, B*HW)
                for h in range(H):
                    o_ref[b, :, h * r + i, pl.ds(j, W, r)] = \
                        rows[:, base + h * W:base + h * W + W]
    else:
        for b in range(B):
            o_ref[b] = y[:, b * HW:(b + 1) * HW]


def upsample_block_pallas(x_nchw, w_oihw, bias, alpha, up_scale, *,
                          compute_dtype=jnp.float32, fuse_shuffle=True):
    """x_nchw: (N, Cin, H, W) -> (N, Cin, H*r, W*r), matching the PyTorch module."""
    N, Cin, H, W = x_nchw.shape
    r = up_scale
    Cout = w_oihw.shape[0]
    assert Cout == Cin * r * r
    HW = H * W
    G = r * r

    itemsize = jnp.dtype(compute_dtype).itemsize
    sub = 8 if itemsize == 4 else 16                 # f32 / bf16 sublane multiple
    K_tot = ((9 * Cin + 1 + sub - 1) // sub) * sub   # taps + bias row, sublane aligned
    pad = ((W + 1 + 127) // 128) * 128               # halo width (>= W+1), lane aligned

    # ---- parameters: permute weight rows to (i*r+j)*Cin + c, fold bias as a column ----
    w_flat = jnp.transpose(w_oihw, (0, 2, 3, 1)).reshape(Cout, 9 * Cin)
    perm = jnp.array([c * G + g for g in range(G) for c in range(Cin)], dtype=jnp.int32)
    w_mat = jnp.zeros((Cout, K_tot), compute_dtype)
    w_mat = w_mat.at[:, :9 * Cin].set(w_flat[perm].astype(compute_dtype))
    w_mat = w_mat.at[:, 9 * Cin].set(bias[perm].astype(compute_dtype))
    alpha_s = jnp.asarray(alpha, jnp.float32).reshape(1)

    # ---- per-step batch B from a hardware-derived VMEM budget ----
    try:
        vmem_cap = int(pltpu.get_tpu_info().vmem_capacity_bytes)
    except Exception:
        vmem_cap = 64 * 1024 * 1024                  # conservative (v7x per-TC)
    budget = int(0.45 * vmem_cap)
    obytes = jnp.dtype(x_nchw.dtype).itemsize

    def vmem_estimate(b):
        blk_io = 2 * b * Cin * HW * obytes + 2 * b * Cout * HW * obytes     # double-buffered
        consts = Cout * K_tot * itemsize + 9 * b * HW * itemsize            # weights + masks
        scratch = Cin * (b * HW + 2 * pad) * itemsize + K_tot * b * HW * itemsize
        return blk_io + consts + scratch

    B = max(1, -(-N // 2))            # cdiv(N, 2): keep >= 2 parallel steps for v7x megacore
    while B > 1 and vmem_estimate(B) > budget:
        B -= 1
    assert vmem_estimate(B) <= budget, \
        "TODO(synk): add a spatially tiled grid axis with a 1-row halo for large images"
    nsteps = -(-N // B)

    # ---- host-precomputed tap validity masks (grid invariant; fetched once) ----
    hh = jnp.arange(H).reshape(H, 1)
    ww = jnp.arange(W).reshape(1, W)
    rows = []
    for dy in (-1, 0, 1):
        for dx in (-1, 0, 1):
            m = (hh + dy >= 0) & (hh + dy < H) & (ww + dx >= 0) & (ww + dx < W)
            rows.append(m.reshape(1, HW))
    masks = jnp.tile(jnp.concatenate(rows, axis=0).astype(compute_dtype), (1, B))  # (9, B*HW)

    x_flat = x_nchw.reshape(N, Cin, HW)              # NCHW consumed natively (free reshape)

    if fuse_shuffle:
        out_shape = jax.ShapeDtypeStruct((N, Cin, H * r, W * r), x_nchw.dtype)
        out_spec = pl.BlockSpec((B, Cin, H * r, W * r), lambda nb: (nb, 0, 0, 0))
    else:
        out_shape = jax.ShapeDtypeStruct((N, Cout, HW), x_nchw.dtype)
        out_spec = pl.BlockSpec((B, Cout, HW), lambda nb: (nb, 0, 0))

    kernel = functools.partial(_conv_shuffle_prelu_kernel,
                               H=H, W=W, r=r, pad=pad, fuse=fuse_shuffle)
    conv = pl.pallas_call(
        kernel,
        out_shape=out_shape,
        grid_spec=pltpu.PrefetchScalarGridSpec(
            num_scalar_prefetch=0,
            grid=(nsteps,),
            in_specs=[
                pl.BlockSpec((B, Cin, HW), lambda nb: (nb, 0, 0)),
                pl.BlockSpec((Cout, K_tot), lambda nb: (0, 0)),
                pl.BlockSpec((9, B * HW), lambda nb: (0, 0)),
                pl.BlockSpec(memory_space=pltpu.MemorySpace.SMEM),
            ],
            out_specs=out_spec,
            scratch_shapes=[
                pltpu.VMEM((Cin, B * HW + 2 * pad), compute_dtype),
                pltpu.VMEM((K_tot, B * HW), compute_dtype),
            ],
        ),
        compiler_params=pltpu.CompilerParams(
            dimension_semantics=("parallel",),
            vmem_limit_bytes=int(min(vmem_cap,
                                     max(32 * 1024 * 1024, 2 * vmem_estimate(B)))),
        ),
    )(x_flat, w_mat, masks, alpha_s)

    if fuse_shuffle:
        return conv
    # Fallback: pixel shuffle in XLA (one extra HBM round trip of the output).
    out = conv.reshape(N, r, r, Cin, H, W).transpose(0, 3, 4, 1, 5, 2)
    return out.reshape(N, Cin, H * r, W * r)


def upsample_block_reference(x_nchw, w_oihw, bias, alpha, up_scale):
    """Pure-JAX NCHW reference matching the PyTorch module exactly."""
    y = jax.lax.conv_general_dilated(
        x_nchw, w_oihw, window_strides=(1, 1), padding="SAME",
        dimension_numbers=("NCHW", "OIHW", "NCHW"),
        precision=jax.lax.Precision.HIGHEST)
    y = y + bias[None, :, None, None]
    N, Cr2, H, W = y.shape
    r = up_scale
    C = Cr2 // (r * r)
    y = y.reshape(N, C, r, r, H, W).transpose(0, 1, 4, 2, 5, 3)
    y = y.reshape(N, C, H * r, W * r)
    return jnp.where(y >= 0, y, alpha * y)


if __name__ == "__main__":
    key = jax.random.PRNGKey(0)
    N, Cin, H, W = 2, 4, 16, 16
    up_scale = 2
    Cout = Cin * up_scale ** 2

    k_x, k_w, k_b = jax.random.split(key, 3)
    x_nchw = jax.random.normal(k_x, (N, Cin, H, W), dtype=jnp.float32)
    # Deterministic synthetic parameters (PyTorch-shaped): Conv2d(Cin, Cin*r^2, 3, pad=1)
    w_oihw = 0.1 * jax.random.normal(k_w, (Cout, Cin, 3, 3), dtype=jnp.float32)
    bias = 0.01 * jax.random.normal(k_b, (Cout,), dtype=jnp.float32)
    alpha = jnp.float32(0.25)  # nn.PReLU() default: single shared parameter

    ref = jax.block_until_ready(
        upsample_block_reference(x_nchw, w_oihw, bias, alpha, up_scale))

    def run(dt, fuse):
        return jax.block_until_ready(
            upsample_block_pallas(x_nchw, w_oihw, bias, alpha, up_scale,
                                  compute_dtype=dt, fuse_shuffle=fuse))

    def run_best(dt):
        # The fused pixel-shuffle store is the only construct relying on lane-strided
        # vst lowering; fall back to conv-layout output + XLA shuffle if this build
        # rejects it, so the script always runs clean.
        try:
            return run(dt, True)
        except Exception:
            return run(dt, False)

    # f32 compute path (tight tolerance).
    out_f32 = run_best(jnp.float32)
    assert out_f32.shape == (N, Cin, H * up_scale, W * up_scale)
    assert jnp.allclose(out_f32, ref, atol=2e-3, rtol=2e-3), \
        float(jnp.max(jnp.abs(out_f32 - ref)))

    # bf16 compute path (v6e/v7x feedback item); f32 accumulation, looser tolerance.
    out_bf16 = run_best(jnp.bfloat16)
    assert out_bf16.shape == (N, Cin, H * up_scale, W * up_scale)
    assert jnp.allclose(out_bf16, ref, atol=5e-2, rtol=5e-2), \
        float(jnp.max(jnp.abs(out_bf16 - ref)))

    print("KERNEL_OK")
</pallas_src>

<mosaic_0001>
module attributes {stable_mosaic.version = 11 : i64} {
  func.func @_conv_shuffle_prelu_kernel(%arg0: i32, %arg1: memref<1x4x256xf32, #tpu.memory_space<vmem>>, %arg2: memref<16x40xf32, #tpu.memory_space<vmem>>, %arg3: memref<9x256xf32, #tpu.memory_space<vmem>>, %arg4: memref<1xf32, #tpu.memory_space<smem>>, %arg5: memref<1x4x32x32xf32, #tpu.memory_space<vmem>>, %arg6: memref<4x512xf32, #tpu.memory_space<vmem>>, %arg7: memref<40x256xf32, #tpu.memory_space<vmem>>) attributes {dimension_semantics = [#tpu.dimension_semantics<parallel>], iteration_bounds = array<i64: 2>, scalar_prefetch = 0 : i64, scratch_operands = 2 : i64, tpu.core_type = #tpu.core_type<tc>, window_params = [{transform_indices = @transform_0, window_bounds = array<i64: 1, 4, 256>}, {pipeline_mode = #tpu.pipeline_mode<synchronous>, transform_indices = @transform_1, window_bounds = array<i64: 16, 40>}, {pipeline_mode = #tpu.pipeline_mode<synchronous>, transform_indices = @transform_2, window_bounds = array<i64: 9, 256>}, {transform_indices = @transform_3, window_bounds = array<i64: 1>}, {transform_indices = @transform_4, window_bounds = array<i64: 1, 4, 32, 32>}]} {
    %cst = arith.constant 0.000000e+00 : f32
    %0 = vector.broadcast %cst : f32 to vector<4x128xf32>
    %c0 = arith.constant 0 : index
    %c0_0 = arith.constant 0 : index
    %1 = vector.load %arg6[%c0, %c0_0] : memref<4x512xf32, #tpu.memory_space<vmem>>, vector<4x128xf32>
    tpu.vector_store %arg6[%c0, %c0_0], %0 {strides = array<i32>} : memref<4x512xf32, #tpu.memory_space<vmem>>, vector<4x128xf32>,
    %cst_1 = arith.constant 0.000000e+00 : f32
    %2 = vector.broadcast %cst_1 : f32 to vector<4x128xf32>
    %c0_2 = arith.constant 0 : index
    %c384 = arith.constant 384 : index
    %3 = vector.load %arg6[%c0_2, %c384] : memref<4x512xf32, #tpu.memory_space<vmem>>, vector<4x128xf32>
    tpu.vector_store %arg6[%c0_2, %c384], %2 {strides = array<i32>} : memref<4x512xf32, #tpu.memory_space<vmem>>, vector<4x128xf32>,
    %cst_3 = arith.constant 1.000000e+00 : f32
    %4 = vector.broadcast %cst_3 : f32 to vector<4x256xf32>
    %c36 = arith.constant 36 : index
    %c0_4 = arith.constant 0 : index
    %5 = vector.load %arg7[%c36, %c0_4] : memref<40x256xf32, #tpu.memory_space<vmem>>, vector<4x256xf32>
    tpu.vector_store %arg7[%c36, %c0_4], %4 {strides = array<i32>} : memref<40x256xf32, #tpu.memory_space<vmem>>, vector<4x256xf32>,
    %c0_5 = arith.constant 0 : index
    %c0_6 = arith.constant 0 : index
    %c0_7 = arith.constant 0 : index
    %6 = vector.load %arg1[%c0_5, %c0_6, %c0_7] : memref<1x4x256xf32, #tpu.memory_space<vmem>>, vector<1x4x256xf32>
    %7 = vector.shape_cast %6 : vector<1x4x256xf32> to vector<4x256xf32>
    %c0_8 = arith.constant 0 : index
    %c128 = arith.constant 128 : index
    %8 = vector.load %arg6[%c0_8, %c128] : memref<4x512xf32, #tpu.memory_space<vmem>>, vector<4x256xf32>
    tpu.vector_store %arg6[%c0_8, %c128], %7 {strides = array<i32>} : memref<4x512xf32, #tpu.memory_space<vmem>>, vector<4x256xf32>,
    %c0_9 = arith.constant 0 : index
    %c111 = arith.constant 111 : index
    %9 = vector.load %arg6[%c0_9, %c111] : memref<4x512xf32, #tpu.memory_space<vmem>>, vector<4x256xf32>
    %c0_10 = arith.constant 0 : index
    %c0_11 = arith.constant 0 : index
    %10 = vector.load %arg3[%c0_10, %c0_11] : memref<9x256xf32, #tpu.memory_space<vmem>>, vector<1x256xf32>
    %11 = vector.broadcast %10 : vector<1x256xf32> to vector<4x256xf32>
    %12 = arith.mulf %9, %11 : vector<4x256xf32>
    %c0_12 = arith.constant 0 : index
    %c0_13 = arith.constant 0 : index
    %13 = vector.load %arg7[%c0_12, %c0_13] : memref<40x256xf32, #tpu.memory_space<vmem>>, vector<4x256xf32>
    tpu.vector_store %arg7[%c0_12, %c0_13], %12 {strides = array<i32>} : memref<40x256xf32, #tpu.memory_space<vmem>>, vector<4x256xf32>,
    %c0_14 = arith.constant 0 : index
    %c112 = arith.constant 112 : index
    %14 = vector.load %arg6[%c0_14, %c112] : memref<4x512xf32, #tpu.memory_space<vmem>>, vector<4x256xf32>
    %c1 = arith.constant 1 : index
    %c0_15 = arith.constant 0 : index
    %15 = vector.load %arg3[%c1, %c0_15] : memref<9x256xf32, #tpu.memory_space<vmem>>, vector<1x256xf32>
    %16 = vector.broadcast %15 : vector<1x256xf32> to vector<4x256xf32>
    %17 = arith.mulf %14, %16 : vector<4x256xf32>
    %c4 = arith.constant 4 : index
    %c0_16 = arith.constant 0 : index
    %18 = vector.load %arg7[%c4, %c0_16] : memref<40x256xf32, #tpu.memory_space<vmem>>, vector<4x256xf32>
    tpu.vector_store %arg7[%c4, %c0_16], %17 {strides = array<i32>} : memref<40x256xf32, #tpu.memory_space<vmem>>, vector<4x256xf32>,
    %c0_17 = arith.constant 0 : index
    %c113 = arith.constant 113 : index
    %19 = vector.load %arg6[%c0_17, %c113] : memref<4x512xf32, #tpu.memory_space<vmem>>, vector<4x256xf32>
    %c2 = arith.constant 2 : index
    %c0_18 = arith.constant 0 : index
    %20 = vector.load %arg3[%c2, %c0_18] : memref<9x256xf32, #tpu.memory_space<vmem>>, vector<1x256xf32>
    %21 = vector.broadcast %20 : vector<1x256xf32> to vector<4x256xf32>
    %22 = arith.mulf %19, %21 : vector<4x256xf32>
    %c8 = arith.constant 8 : index
    %c0_19 = arith.constant 0 : index
    %23 = vector.load %arg7[%c8, %c0_19] : memref<40x256xf32, #tpu.memory_space<vmem>>, vector<4x256xf32>
    tpu.vector_store %arg7[%c8, %c0_19], %22 {strides = array<i32>} : memref<40x256xf32, #tpu.memory_space<vmem>>, vector<4x256xf32>,
    %c0_20 = arith.constant 0 : index
    %c127 = arith.constant 127 : index
    %24 = vector.load %arg6[%c0_20, %c127] : memref<4x512xf32, #tpu.memory_space<vmem>>, vector<4x256xf32>
    %c3 = arith.constant 3 : index
    %c0_21 = arith.constant 0 : index
    %25 = vector.load %arg3[%c3, %c0_21] : memref<9x256xf32, #tpu.memory_space<vmem>>, vector<1x256xf32>
    %26 = vector.broadcast %25 : vector<1x256xf32> to vector<4x256xf32>
    %27 = arith.mulf %24, %26 : vector<4x256xf32>
    %c12 = arith.constant 12 : index
    %c0_22 = arith.constant 0 : index
    %28 = vector.load %arg7[%c12, %c0_22] : memref<40x256xf32, #tpu.memory_space<vmem>>, vector<4x256xf32>
    tpu.vector_store %arg7[%c12, %c0_22], %27 {strides = array<i32>} : memref<40x256xf32, #tpu.memory_space<vmem>>, vector<4x256xf32>,
    %c0_23 = arith.constant 0 : index
    %c128_24 = arith.constant 128 : index
    %29 = vector.load %arg6[%c0_23, %c128_24] : memref<4x512xf32, #tpu.memory_space<vmem>>, vector<4x256xf32>
    %c16 = arith.constant 16 : index
    %c0_25 = arith.constant 0 : index
    %30 = vector.load %arg7[%c16, %c0_25] : memref<40x256xf32, #tpu.memory_space<vmem>>, vector<4x256xf32>
    tpu.vector_store %arg7[%c16, %c0_25], %29 {strides = array<i32>} : memref<40x256xf32, #tpu.memory_space<vmem>>, vector<4x256xf32>,
    %c0_26 = arith.constant 0 : index
    %c129 = arith.constant 129 : index
    %31 = vector.load %arg6[%c0_26, %c129] : memref<4x512xf32, #tpu.memory_space<vmem>>, vector<4x256xf32>
    %c5 = arith.constant 5 : index
    %c0_27 = arith.constant 0 : index
    %32 = vector.load %arg3[%c5, %c0_27] : memref<9x256xf32, #tpu.memory_space<vmem>>, vector<1x256xf32>
    %33 = vector.broadcast %32 : vector<1x256xf32> to vector<4x256xf32>
    %34 = arith.mulf %31, %33 : vector<4x256xf32>
    %c20 = arith.constant 20 : index
    %c0_28 = arith.constant 0 : index
    %35 = vector.load %arg7[%c20, %c0_28] : memref<40x256xf32, #tpu.memory_space<vmem>>, vector<4x256xf32>
    tpu.vector_store %arg7[%c20, %c0_28], %34 {strides = array<i32>} : memref<40x256xf32, #tpu.memory_space<vmem>>, vector<4x256xf32>,
    %c0_29 = arith.constant 0 : index
    %c143 = arith.constant 143 : index
    %36 = vector.load %arg6[%c0_29, %c143] : memref<4x512xf32, #tpu.memory_space<vmem>>, vector<4x256xf32>
    %c6 = arith.constant 6 : index
    %c0_30 = arith.constant 0 : index
    %37 = vector.load %arg3[%c6, %c0_30] : memref<9x256xf32, #tpu.memory_space<vmem>>, vector<1x256xf32>
    %38 = vector.broadcast %37 : vector<1x256xf32> to vector<4x256xf32>
    %39 = arith.mulf %36, %38 : vector<4x256xf32>
    %c24 = arith.constant 24 : index
    %c0_31 = arith.constant 0 : index
    %40 = vector.load %arg7[%c24, %c0_31] : memref<40x256xf32, #tpu.memory_space<vmem>>, vector<4x256xf32>
    tpu.vector_store %arg7[%c24, %c0_31], %39 {strides = array<i32>} : memref<40x256xf32, #tpu.memory_space<vmem>>, vector<4x256xf32>,
    %c0_32 = arith.constant 0 : index
    %c144 = arith.constant 144 : index
    %41 = vector.load %arg6[%c0_32, %c144] : memref<4x512xf32, #tpu.memory_space<vmem>>, vector<4x256xf32>
    %c7 = arith.constant 7 : index
    %c0_33 = arith.constant 0 : index
    %42 = vector.load %arg3[%c7, %c0_33] : memref<9x256xf32, #tpu.memory_space<vmem>>, vector<1x256xf32>
    %43 = vector.broadcast %42 : vector<1x256xf32> to vector<4x256xf32>
    %44 = arith.mulf %41, %43 : vector<4x256xf32>
    %c28 = arith.constant 28 : index
    %c0_34 = arith.constant 0 : index
    %45 = vector.load %arg7[%c28, %c0_34] : memref<40x256xf32, #tpu.memory_space<vmem>>, vector<4x256xf32>
    tpu.vector_store %arg7[%c28, %c0_34], %44 {strides = array<i32>} : memref<40x256xf32, #tpu.memory_space<vmem>>, vector<4x256xf32>,
    %c0_35 = arith.constant 0 : index
    %c145 = arith.constant 145 : index
    %46 = vector.load %arg6[%c0_35, %c145] : memref<4x512xf32, #tpu.memory_space<vmem>>, vector<4x256xf32>
    %c8_36 = arith.constant 8 : index
    %c0_37 = arith.constant 0 : index
    %47 = vector.load %arg3[%c8_36, %c0_37] : memref<9x256xf32, #tpu.memory_space<vmem>>, vector<1x256xf32>
    %48 = vector.broadcast %47 : vector<1x256xf32> to vector<4x256xf32>
    %49 = arith.mulf %46, %48 : vector<4x256xf32>
    %c32 = arith.constant 32 : index
    %c0_38 = arith.constant 0 : index
    %50 = vector.load %arg7[%c32, %c0_38] : memref<40x256xf32, #tpu.memory_space<vmem>>, vector<4x256xf32>
    tpu.vector_store %arg7[%c32, %c0_38], %49 {strides = array<i32>} : memref<40x256xf32, #tpu.memory_space<vmem>>, vector<4x256xf32>,
    %c0_39 = arith.constant 0 : index
    %c0_40 = arith.constant 0 : index
    %51 = vector.load %arg2[%c0_39, %c0_40] : memref<16x40xf32, #tpu.memory_space<vmem>>, vector<16x40xf32>
    %c0_41 = arith.constant 0 : index
    %c0_42 = arith.constant 0 : index
    %52 = vector.load %arg7[%c0_41, %c0_42] : memref<40x256xf32, #tpu.memory_space<vmem>>, vector<40x256xf32>
    %cst_43 = arith.constant dense<0.000000e+00> : vector<16x256xf32>
    %53 = tpu.matmul %51, %52, %cst_43 {dimension_numbers = #tpu.dot_dimension_numbers<[1], [0], [0], [1], [0, 0, 1, 1], [], []>} : vector<16x40xf32>, vector<40x256xf32>, vector<16x256xf32> -> vector<16x256xf32>
    %c0_44 = arith.constant 0 : index
    %54 = memref.load %arg4[%c0_44] : memref<1xf32, #tpu.memory_space<smem>>
    %cst_45 = arith.constant 0.000000e+00 : f32
    %55 = vector.broadcast %cst_45 : f32 to vector<16x256xf32>
    %56 = arith.cmpf oge, %53, %55 : vector<16x256xf32>
    %57 = vector.broadcast %54 : f32 to vector<16x256xf32>
    %58 = arith.mulf %57, %53 : vector<16x256xf32>
    %59 = arith.select %56, %53, %58 : vector<16x256xi1>, vector<16x256xf32>
    %60 = vector.extract_strided_slice %59 {offsets = [0, 0], sizes = [4, 256], strides = [1, 1]} : vector<16x256xf32> to vector<4x256xf32>
    %61 = vector.extract_strided_slice %60 {offsets = [0, 0], sizes = [4, 16], strides = [1, 1]} : vector<4x256xf32> to vector<4x16xf32>
    %c0_46 = arith.constant 0 : index
    %c0_47 = arith.constant 0 : index
    %c0_48 = arith.constant 0 : index
    %c0_49 = arith.constant 0 : index
    %62 = tpu.strided_load %arg5[%c0_46, %c0_47, %c0_48, %c0_49] {strides = array<i32: 1, 1, 1, 2>} : memref<1x4x32x32xf32, #tpu.memory_space<vmem>>, vector<1x4x1x16xf32>
    %63 = vector.shape_cast %62 : vector<1x4x1x16xf32> to vector<4x16xf32>
    %64 = vector.shape_cast %61 : vector<4x16xf32> to vector<1x4x1x16xf32>
    tpu.strided_store %arg5[%c0_46, %c0_47, %c0_48, %c0_49], %64 {strides = array<i32: 1, 1, 1, 2>} : memref<1x4x32x32xf32, #tpu.memory_space<vmem>>, vector<1x4x1x16xf32>
    %65 = vector.extract_strided_slice %60 {offsets = [0, 16], sizes = [4, 16], strides = [1, 1]} : vector<4x256xf32> to vector<4x16xf32>
    %c0_50 = arith.constant 0 : index
    %c0_51 = arith.constant 0 : index
    %c2_52 = arith.constant 2 : index
    %c0_53 = arith.constant 0 : index
    %66 = tpu.strided_load %arg5[%c0_50, %c0_51, %c2_52, %c0_53] {strides = array<i32: 1, 1, 1, 2>} : memref<1x4x32x32xf32, #tpu.memory_space<vmem>>, vector<1x4x1x16xf32>
    %67 = vector.shape_cast %66 : vector<1x4x1x16xf32> to vector<4x16xf32>
    %68 = vector.shape_cast %65 : vector<4x16xf32> to vector<1x4x1x16xf32>
    tpu.strided_store %arg5[%c0_50, %c0_51, %c2_52, %c0_53], %68 {strides = array<i32: 1, 1, 1, 2>} : memref<1x4x32x32xf32, #tpu.memory_space<vmem>>, vector<1x4x1x16xf32>
    %69 = vector.extract_strided_slice %60 {offsets = [0, 32], sizes = [4, 16], strides = [1, 1]} : vector<4x256xf32> to vector<4x16xf32>
    %c0_54 = arith.constant 0 : index
    %c0_55 = arith.constant 0 : index
    %c4_56 = arith.constant 4 : index
    %c0_57 = arith.constant 0 : index
    %70 = tpu.strided_load %arg5[%c0_54, %c0_55, %c4_56, %c0_57] {strides = array<i32: 1, 1, 1, 2>} : memref<1x4x32x32xf32, #tpu.memory_space<vmem>>, vector<1x4x1x16xf32>
    %71 = vector.shape_cast %70 : vector<1x4x1x16xf32> to vector<4x16xf32>
    %72 = vector.shape_cast %69 : vector<4x16xf32> to vector<1x4x1x16xf32>
    tpu.strided_store %arg5[%c0_54, %c0_55, %c4_56, %c0_57], %72 {strides = array<i32: 1, 1, 1, 2>} : memref<1x4x32x32xf32, #tpu.memory_space<vmem>>, vector<1x4x1x16xf32>
    %73 = vector.extract_strided_slice %60 {offsets = [0, 48], sizes = [4, 16], strides = [1, 1]} : vector<4x256xf32> to vector<4x16xf32>
    %c0_58 = arith.constant 0 : index
    %c0_59 = arith.constant 0 : index
    %c6_60 = arith.constant 6 : index
    %c0_61 = arith.constant 0 : index
    %74 = tpu.strided_load %arg5[%c0_58, %c0_59, %c6_60, %c0_61] {strides = array<i32: 1, 1, 1, 2>} : memref<1x4x32x32xf32, #tpu.memory_space<vmem>>, vector<1x4x1x16xf32>
    %75 = vector.shape_cast %74 : vector<1x4x1x16xf32> to vector<4x16xf32>
    %76 = vector.shape_cast %73 : vector<4x16xf32> to vector<1x4x1x16xf32>
    tpu.strided_store %arg5[%c0_58, %c0_59, %c6_60, %c0_61], %76 {strides = array<i32: 1, 1, 1, 2>} : memref<1x4x32x32xf32, #tpu.memory_space<vmem>>, vector<1x4x1x16xf32>
    %77 = vector.extract_strided_slice %60 {offsets = [0, 64], sizes = [4, 16], strides = [1, 1]} : vector<4x256xf32> to vector<4x16xf32>
    %c0_62 = arith.constant 0 : index
    %c0_63 = arith.constant 0 : index
    %c8_64 = arith.constant 8 : index
    %c0_65 = arith.constant 0 : index
    %78 = tpu.strided_load %arg5[%c0_62, %c0_63, %c8_64, %c0_65] {strides = array<i32: 1, 1, 1, 2>} : memref<1x4x32x32xf32, #tpu.memory_space<vmem>>, vector<1x4x1x16xf32>
    %79 = vector.shape_cast %78 : vector<1x4x1x16xf32> to vector<4x16xf32>
    %80 = vector.shape_cast %77 : vector<4x16xf32> to vector<1x4x1x16xf32>
    tpu.strided_store %arg5[%c0_62, %c0_63, %c8_64, %c0_65], %80 {strides = array<i32: 1, 1, 1, 2>} : memref<1x4x32x32xf32, #tpu.memory_space<vmem>>, vector<1x4x1x16xf32>
    %81 = vector.extract_strided_slice %60 {offsets = [0, 80], sizes = [4, 16], strides = [1, 1]} : vector<4x256xf32> to vector<4x16xf32>
    %c0_66 = arith.constant 0 : index
    %c0_67 = arith.constant 0 : index
    %c10 = arith.constant 10 : index
    %c0_68 = arith.constant 0 : index
    %82 = tpu.strided_load %arg5[%c0_66, %c0_67, %c10, %c0_68] {strides = array<i32: 1, 1, 1, 2>} : memref<1x4x32x32xf32, #tpu.memory_space<vmem>>, vector<1x4x1x16xf32>
    %83 = vector.shape_cast %82 : vector<1x4x1x16xf32> to vector<4x16xf32>
    %84 = vector.shape_cast %81 : vector<4x16xf32> to vector<1x4x1x16xf32>
    tpu.strided_store %arg5[%c0_66, %c0_67, %c10, %c0_68], %84 {strides = array<i32: 1, 1, 1, 2>} : memref<1x4x32x32xf32, #tpu.memory_space<vmem>>, vector<1x4x1x16xf32>
    %85 = vector.extract_strided_slice %60 {offsets = [0, 96], sizes = [4, 16], strides = [1, 1]} : vector<4x256xf32> to vector<4x16xf32>
    %c0_69 = arith.constant 0 : index
    %c0_70 = arith.constant 0 : index
    %c12_71 = arith.constant 12 : index
    %c0_72 = arith.constant 0 : index
    %86 = tpu.strided_load %arg5[%c0_69, %c0_70, %c12_71, %c0_72] {strides = array<i32: 1, 1, 1, 2>} : memref<1x4x32x32xf32, #tpu.memory_space<vmem>>, vector<1x4x1x16xf32>
    %87 = vector.shape_cast %86 : vector<1x4x1x16xf32> to vector<4x16xf32>
    %88 = vector.shape_cast %85 : vector<4x16xf32> to vector<1x4x1x16xf32>
    tpu.strided_store %arg5[%c0_69, %c0_70, %c12_71, %c0_72], %88 {strides = array<i32: 1, 1, 1, 2>} : memref<1x4x32x32xf32, #tpu.memory_space<vmem>>, vector<1x4x1x16xf32>
    %89 = vector.extract_strided_slice %60 {offsets = [0, 112], sizes = [4, 16], strides = [1, 1]} : vector<4x256xf32> to vector<4x16xf32>
    %c0_73 = arith.constant 0 : index
    %c0_74 = arith.constant 0 : index
    %c14 = arith.constant 14 : index
    %c0_75 = arith.constant 0 : index
    %90 = tpu.strided_load %arg5[%c0_73, %c0_74, %c14, %c0_75] {strides = array<i32: 1, 1, 1, 2>} : memref<1x4x32x32xf32, #tpu.memory_space<vmem>>, vector<1x4x1x16xf32>
    %91 = vector.shape_cast %90 : vector<1x4x1x16xf32> to vector<4x16xf32>
    %92 = vector.shape_cast %89 : vector<4x16xf32> to vector<1x4x1x16xf32>
    tpu.strided_store %arg5[%c0_73, %c0_74, %c14, %c0_75], %92 {strides = array<i32: 1, 1, 1, 2>} : memref<1x4x32x32xf32, #tpu.memory_space<vmem>>, vector<1x4x1x16xf32>
    %93 = vector.extract_strided_slice %60 {offsets = [0, 128], sizes = [4, 16], strides = [1, 1]} : vector<4x256xf32> to vector<4x16xf32>
    %c0_76 = arith.constant 0 : index
    %c0_77 = arith.constant 0 : index
    %c16_78 = arith.constant 16 : index
    %c0_79 = arith.constant 0 : index
    %94 = tpu.strided_load %arg5[%c0_76, %c0_77, %c16_78, %c0_79] {strides = array<i32: 1, 1, 1, 2>} : memref<1x4x32x32xf32, #tpu.memory_space<vmem>>, vector<1x4x1x16xf32>
    %95 = vector.shape_cast %94 : vector<1x4x1x16xf32> to vector<4x16xf32>
    %96 = vector.shape_cast %93 : vector<4x16xf32> to vector<1x4x1x16xf32>
    tpu.strided_store %arg5[%c0_76, %c0_77, %c16_78, %c0_79], %96 {strides = array<i32: 1, 1, 1, 2>} : memref<1x4x32x32xf32, #tpu.memory_space<vmem>>, vector<1x4x1x16xf32>
    %97 = vector.extract_strided_slice %60 {offsets = [0, 144], sizes = [4, 16], strides = [1, 1]} : vector<4x256xf32> to vector<4x16xf32>
    %c0_80 = arith.constant 0 : index
    %c0_81 = arith.constant 0 : index
    %c18 = arith.constant 18 : index
    %c0_82 = arith.constant 0 : index
    %98 = tpu.strided_load %arg5[%c0_80, %c0_81, %c18, %c0_82] {strides = array<i32: 1, 1, 1, 2>} : memref<1x4x32x32xf32, #tpu.memory_space<vmem>>, vector<1x4x1x16xf32>
    %99 = vector.shape_cast %98 : vector<1x4x1x16xf32> to vector<4x16xf32>
    %100 = vector.shape_cast %97 : vector<4x16xf32> to vector<1x4x1x16xf32>
    tpu.strided_store %arg5[%c0_80, %c0_81, %c18, %c0_82], %100 {strides = array<i32: 1, 1, 1, 2>} : memref<1x4x32x32xf32, #tpu.memory_space<vmem>>, vector<1x4x1x16xf32>
    %101 = vector.extract_strided_slice %60 {offsets = [0, 160], sizes = [4, 16], strides = [1, 1]} : vector<4x256xf32> to vector<4x16xf32>
    %c0_83 = arith.constant 0 : index
    %c0_84 = arith.constant 0 : index
    %c20_85 = arith.constant 20 : index
    %c0_86 = arith.constant 0 : index
    %102 = tpu.strided_load %arg5[%c0_83, %c0_84, %c20_85, %c0_86] {strides = array<i32: 1, 1, 1, 2>} : memref<1x4x32x32xf32, #tpu.memory_space<vmem>>, vector<1x4x1x16xf32>
    %103 = vector.shape_cast %102 : vector<1x4x1x16xf32> to vector<4x16xf32>
    %104 = vector.shape_cast %101 : vector<4x16xf32> to vector<1x4x1x16xf32>
    tpu.strided_store %arg5[%c0_83, %c0_84, %c20_85, %c0_86], %104 {strides = array<i32: 1, 1, 1, 2>} : memref<1x4x32x32xf32, #tpu.memory_space<vmem>>, vector<1x4x1x16xf32>
    %105 = vector.extract_strided_slice %60 {offsets = [0, 176], sizes = [4, 16], strides = [1, 1]} : vector<4x256xf32> to vector<4x16xf32>
    %c0_87 = arith.constant 0 : index
    %c0_88 = arith.constant 0 : index
    %c22 = arith.constant 22 : index
    %c0_89 = arith.constant 0 : index
    %106 = tpu.strided_load %arg5[%c0_87, %c0_88, %c22, %c0_89] {strides = array<i32: 1, 1, 1, 2>} : memref<1x4x32x32xf32, #tpu.memory_space<vmem>>, vector<1x4x1x16xf32>
    %107 = vector.shape_cast %106 : vector<1x4x1x16xf32> to vector<4x16xf32>
    %108 = vector.shape_cast %105 : vector<4x16xf32> to vector<1x4x1x16xf32>
    tpu.strided_store %arg5[%c0_87, %c0_88, %c22, %c0_89], %108 {strides = array<i32: 1, 1, 1, 2>} : memref<1x4x32x32xf32, #tpu.memory_space<vmem>>, vector<1x4x1x16xf32>
    %109 = vector.extract_strided_slice %60 {offsets = [0, 192], sizes = [4, 16], strides = [1, 1]} : vector<4x256xf32> to vector<4x16xf32>
    %c0_90 = arith.constant 0 : index
    %c0_91 = arith.constant 0 : index
    %c24_92 = arith.constant 24 : index
    %c0_93 = arith.constant 0 : index
    %110 = tpu.strided_load %arg5[%c0_90, %c0_91, %c24_92, %c0_93] {strides = array<i32: 1, 1, 1, 2>} : memref<1x4x32x32xf32, #tpu.memory_space<vmem>>, vector<1x4x1x16xf32>
    %111 = vector.shape_cast %110 : vector<1x4x1x16xf32> to vector<4x16xf32>
    %112 = vector.shape_cast %109 : vector<4x16xf32> to vector<1x4x1x16xf32>
    tpu.strided_store %arg5[%c0_90, %c0_91, %c24_92, %c0_93], %112 {strides = array<i32: 1, 1, 1, 2>} : memref<1x4x32x32xf32, #tpu.memory_space<vmem>>, vector<1x4x1x16xf32>
    %113 = vector.extract_strided_slice %60 {offsets = [0, 208], sizes = [4, 16], strides = [1, 1]} : vector<4x256xf32> to vector<4x16xf32>
    %c0_94 = arith.constant 0 : index
    %c0_95 = arith.constant 0 : index
    %c26 = arith.constant 26 : index
    %c0_96 = arith.constant 0 : index
    %114 = tpu.strided_load %arg5[%c0_94, %c0_95, %c26, %c0_96] {strides = array<i32: 1, 1, 1, 2>} : memref<1x4x32x32xf32, #tpu.memory_space<vmem>>, vector<1x4x1x16xf32>
    %115 = vector.shape_cast %114 : vector<1x4x1x16xf32> to vector<4x16xf32>
    %116 = vector.shape_cast %113 : vector<4x16xf32> to vector<1x4x1x16xf32>
    tpu.strided_store %arg5[%c0_94, %c0_95, %c26, %c0_96], %116 {strides = array<i32: 1, 1, 1, 2>} : memref<1x4x32x32xf32, #tpu.memory_space<vmem>>, vector<1x4x1x16xf32>
    %117 = vector.extract_strided_slice %60 {offsets = [0, 224], sizes = [4, 16], strides = [1, 1]} : vector<4x256xf32> to vector<4x16xf32>
    %c0_97 = arith.constant 0 : index
    %c0_98 = arith.constant 0 : index
    %c28_99 = arith.constant 28 : index
    %c0_100 = arith.constant 0 : index
    %118 = tpu.strided_load %arg5[%c0_97, %c0_98, %c28_99, %c0_100] {strides = array<i32: 1, 1, 1, 2>} : memref<1x4x32x32xf32, #tpu.memory_space<vmem>>, vector<1x4x1x16xf32>
    %119 = vector.shape_cast %118 : vector<1x4x1x16xf32> to vector<4x16xf32>
    %120 = vector.shape_cast %117 : vector<4x16xf32> to vector<1x4x1x16xf32>
    tpu.strided_store %arg5[%c0_97, %c0_98, %c28_99, %c0_100], %120 {strides = array<i32: 1, 1, 1, 2>} : memref<1x4x32x32xf32, #tpu.memory_space<vmem>>, vector<1x4x1x16xf32>
    %121 = vector.extract_strided_slice %60 {offsets = [0, 240], sizes = [4, 16], strides = [1, 1]} : vector<4x256xf32> to vector<4x16xf32>
    %c0_101 = arith.constant 0 : index
    %c0_102 = arith.constant 0 : index
    %c30 = arith.constant 30 : index
    %c0_103 = arith.constant 0 : index
    %122 = tpu.strided_load %arg5[%c0_101, %c0_102, %c30, %c0_103] {strides = array<i32: 1, 1, 1, 2>} : memref<1x4x32x32xf32, #tpu.memory_space<vmem>>, vector<1x4x1x16xf32>
    %123 = vector.shape_cast %122 : vector<1x4x1x16xf32> to vector<4x16xf32>
    %124 = vector.shape_cast %121 : vector<4x16xf32> to vector<1x4x1x16xf32>
    tpu.strided_store %arg5[%c0_101, %c0_102, %c30, %c0_103], %124 {strides = array<i32: 1, 1, 1, 2>} : memref<1x4x32x32xf32, #tpu.memory_space<vmem>>, vector<1x4x1x16xf32>
    %125 = vector.extract_strided_slice %59 {offsets = [4, 0], sizes = [4, 256], strides = [1, 1]} : vector<16x256xf32> to vector<4x256xf32>
    %126 = vector.extract_strided_slice %125 {offsets = [0, 0], sizes = [4, 16], strides = [1, 1]} : vector<4x256xf32> to vector<4x16xf32>
    %c0_104 = arith.constant 0 : index
    %c0_105 = arith.constant 0 : index
    %c0_106 = arith.constant 0 : index
    %c1_107 = arith.constant 1 : index
    %127 = tpu.strided_load %arg5[%c0_104, %c0_105, %c0_106, %c1_107] {strides = array<i32: 1, 1, 1, 2>} : memref<1x4x32x32xf32, #tpu.memory_space<vmem>>, vector<1x4x1x16xf32>
    %128 = vector.shape_cast %127 : vector<1x4x1x16xf32> to vector<4x16xf32>
    %129 = vector.shape_cast %126 : vector<4x16xf32> to vector<1x4x1x16xf32>
    tpu.strided_store %arg5[%c0_104, %c0_105, %c0_106, %c1_107], %129 {strides = array<i32: 1, 1, 1, 2>} : memref<1x4x32x32xf32, #tpu.memory_space<vmem>>, vector<1x4x1x16xf32>
    %130 = vector.extract_strided_slice %125 {offsets = [0, 16], sizes = [4, 16], strides = [1, 1]} : vector<4x256xf32> to vector<4x16xf32>
    %c0_108 = arith.constant 0 : index
    %c0_109 = arith.constant 0 : index
    %c2_110 = arith.constant 2 : index
    %c1_111 = arith.constant 1 : index
    %131 = tpu.strided_load %arg5[%c0_108, %c0_109, %c2_110, %c1_111] {strides = array<i32: 1, 1, 1, 2>} : memref<1x4x32x32xf32, #tpu.memory_space<vmem>>, vector<1x4x1x16xf32>
    %132 = vector.shape_cast %131 : vector<1x4x1x16xf32> to vector<4x16xf32>
    %133 = vector.shape_cast %130 : vector<4x16xf32> to vector<1x4x1x16xf32>
    tpu.strided_store %arg5[%c0_108, %c0_109, %c2_110, %c1_111], %133 {strides = array<i32: 1, 1, 1, 2>} : memref<1x4x32x32xf32, #tpu.memory_space<vmem>>, vector<1x4x1x16xf32>
    %134 = vector.extract_strided_slice %125 {offsets = [0, 32], sizes = [4, 16], strides = [1, 1]} : vector<4x256xf32> to vector<4x16xf32>
    %c0_112 = arith.constant 0 : index
    %c0_113 = arith.constant 0 : index
    %c4_114 = arith.constant 4 : index
    %c1_115 = arith.constant 1 : index
    %135 = tpu.strided_load %arg5[%c0_112, %c0_113, %c4_114, %c1_115] {strides = array<i32: 1, 1, 1, 2>} : memref<1x4x32x32xf32, #tpu.memory_space<vmem>>, vector<1x4x1x16xf32>
    %136 = vector.shape_cast %135 : vector<1x4x1x16xf32> to vector<4x16xf32>
    %137 = vector.shape_cast %134 : vector<4x16xf32> to vector<1x4x1x16xf32>
    tpu.strided_store %arg5[%c0_112, %c0_113, %c4_114, %c1_115], %137 {strides = array<i32: 1, 1, 1, 2>} : memref<1x4x32x32xf32, #tpu.memory_space<vmem>>, vector<1x4x1x16xf32>
    %138 = vector.extract_strided_slice %125 {offsets = [0, 48], sizes = [4, 16], strides = [1, 1]} : vector<4x256xf32> to vector<4x16xf32>
    %c0_116 = arith.constant 0 : index
    %c0_117 = arith.constant 0 : index
    %c6_118 = arith.constant 6 : index
    %c1_119 = arith.constant 1 : index
    %139 = tpu.strided_load %arg5[%c0_116, %c0_117, %c6_118, %c1_119] {strides = array<i32: 1, 1, 1, 2>} : memref<1x4x32x32xf32, #tpu.memory_space<vmem>>, vector<1x4x1x16xf32>
    %140 = vector.shape_cast %139 : vector<1x4x1x16xf32> to vector<4x16xf32>
    %141 = vector.shape_cast %138 : vector<4x16xf32> to vector<1x4x1x16xf32>
    tpu.strided_store %arg5[%c0_116, %c0_117, %c6_118, %c1_119], %141 {strides = array<i32: 1, 1, 1, 2>} : memref<1x4x32x32xf32, #tpu.memory_space<vmem>>, vector<1x4x1x16xf32>
    %142 = vector.extract_strided_slice %125 {offsets = [0, 64], sizes = [4, 16], strides = [1, 1]} : vector<4x256xf32> to vector<4x16xf32>
    %c0_120 = arith.constant 0 : index
    %c0_121 = arith.constant 0 : index
    %c8_122 = arith.constant 8 : index
    %c1_123 = arith.constant 1 : index
    %143 = tpu.strided_load %arg5[%c0_120, %c0_121, %c8_122, %c1_123] {strides = array<i32: 1, 1, 1, 2>} : memref<1x4x32x32xf32, #tpu.memory_space<vmem>>, vector<1x4x1x16xf32>
    %144 = vector.shape_cast %143 : vector<1x4x1x16xf32> to vector<4x16xf32>
    %145 = vector.shape_cast %142 : vector<4x16xf32> to vector<1x4x1x16xf32>
    tpu.strided_store %arg5[%c0_120, %c0_121, %c8_122, %c1_123], %145 {strides = array<i32: 1, 1, 1, 2>} : memref<1x4x32x32xf32, #tpu.memory_space<vmem>>, vector<1x4x1x16xf32>
    %146 = vector.extract_strided_slice %125 {offsets = [0, 80], sizes = [4, 16], strides = [1, 1]} : vector<4x256xf32> to vector<4x16xf32>
    %c0_124 = arith.constant 0 : index
    %c0_125 = arith.constant 0 : index
    %c10_126 = arith.constant 10 : index
    %c1_127 = arith.constant 1 : index
    %147 = tpu.strided_load %arg5[%c0_124, %c0_125, %c10_126, %c1_127] {strides = array<i32: 1, 1, 1, 2>} : memref<1x4x32x32xf32, #tpu.memory_space<vmem>>, vector<1x4x1x16xf32>
    %148 = vector.shape_cast %147 : vector<1x4x1x16xf32> to vector<4x16xf32>
    %149 = vector.shape_cast %146 : vector<4x16xf32> to vector<1x4x1x16xf32>
    tpu.strided_store %arg5[%c0_124, %c0_125, %c10_126, %c1_127], %149 {strides = array<i32: 1, 1, 1, 2>} : memref<1x4x32x32xf32, #tpu.memory_space<vmem>>, vector<1x4x1x16xf32>
    %150 = vector.extract_strided_slice %125 {offsets = [0, 96], sizes = [4, 16], strides = [1, 1]} : vector<4x256xf32> to vector<4x16xf32>
    %c0_128 = arith.constant 0 : index
    %c0_129 = arith.constant 0 : index
    %c12_130 = arith.constant 12 : index
    %c1_131 = arith.constant 1 : index
    %151 = tpu.strided_load %arg5[%c0_128, %c0_129, %c12_130, %c1_131] {strides = array<i32: 1, 1, 1, 2>} : memref<1x4x32x32xf32, #tpu.memory_space<vmem>>, vector<1x4x1x16xf32>
    %152 = vector.shape_cast %151 : vector<1x4x1x16xf32> to vector<4x16xf32>
    %153 = vector.shape_cast %150 : vector<4x16xf32> to vector<1x4x1x16xf32>
    tpu.strided_store %arg5[%c0_128, %c0_129, %c12_130, %c1_131], %153 {strides = array<i32: 1, 1, 1, 2>} : memref<1x4x32x32xf32, #tpu.memory_space<vmem>>, vector<1x4x1x16xf32>
    %154 = vector.extract_strided_slice %125 {offsets = [0, 112], sizes = [4, 16], strides = [1, 1]} : vector<4x256xf32> to vector<4x16xf32>
    %c0_132 = arith.constant 0 : index
    %c0_133 = arith.constant 0 : index
    %c14_134 = arith.constant 14 : index
    %c1_135 = arith.constant 1 : index
    %155 = tpu.strided_load %arg5[%c0_132, %c0_133, %c14_134, %c1_135] {strides = array<i32: 1, 1, 1, 2>} : memref<1x4x32x32xf32, #tpu.memory_space<vmem>>, vector<1x4x1x16xf32>
    %156 = vector.shape_cast %155 : vector<1x4x1x16xf32> to vector<4x16xf32>
    %157 = vector.shape_cast %154 : vector<4x16xf32> to vector<1x4x1x16xf32>
    tpu.strided_store %arg5[%c0_132, %c0_133, %c14_134, %c1_135], %157 {strides = array<i32: 1, 1, 1, 2>} : memref<1x4x32x32xf32, #tpu.memory_space<vmem>>, vector<1x4x1x16xf32>
    %158 = vector.extract_strided_slice %125 {offsets = [0, 128], sizes = [4, 16], strides = [1, 1]} : vector<4x256xf32> to vector<4x16xf32>
    %c0_136 = arith.constant 0 : index
    %c0_137 = arith.constant 0 : index
    %c16_138 = arith.constant 16 : index
    %c1_139 = arith.constant 1 : index
    %159 = tpu.strided_load %arg5[%c0_136, %c0_137, %c16_138, %c1_139] {strides = array<i32: 1, 1, 1, 2>} : memref<1x4x32x32xf32, #tpu.memory_space<vmem>>, vector<1x4x1x16xf32>
    %160 = vector.shape_cast %159 : vector<1x4x1x16xf32> to vector<4x16xf32>
    %161 = vector.shape_cast %158 : vector<4x16xf32> to vector<1x4x1x16xf32>
    tpu.strided_store %arg5[%c0_136, %c0_137, %c16_138, %c1_139], %161 {strides = array<i32: 1, 1, 1, 2>} : memref<1x4x32x32xf32, #tpu.memory_space<vmem>>, vector<1x4x1x16xf32>
    %162 = vector.extract_strided_slice %125 {offsets = [0, 144], sizes = [4, 16], strides = [1, 1]} : vector<4x256xf32> to vector<4x16xf32>
    %c0_140 = arith.constant 0 : index
    %c0_141 = arith.constant 0 : index
    %c18_142 = arith.constant 18 : index
    %c1_143 = arith.constant 1 : index
    %163 = tpu.strided_load %arg5[%c0_140, %c0_141, %c18_142, %c1_143] {strides = array<i32: 1, 1, 1, 2>} : memref<1x4x32x32xf32, #tpu.memory_space<vmem>>, vector<1x4x1x16xf32>
    %164 = vector.shape_cast %163 : vector<1x4x1x16xf32> to vector<4x16xf32>
    %165 = vector.shape_cast %162 : vector<4x16xf32> to vector<1x4x1x16xf32>
    tpu.strided_store %arg5[%c0_140, %c0_141, %c18_142, %c1_143], %165 {strides = array<i32: 1, 1, 1, 2>} : memref<1x4x32x32xf32, #tpu.memory_space<vmem>>, vector<1x4x1x16xf32>
    %166 = vector.extract_strided_slice %125 {offsets = [0, 160], sizes = [4, 16], strides = [1, 1]} : vector<4x256xf32> to vector<4x16xf32>
    %c0_144 = arith.constant 0 : index
    %c0_145 = arith.constant 0 : index
    %c20_146 = arith.constant 20 : index
    %c1_147 = arith.constant 1 : index
    %167 = tpu.strided_load %arg5[%c0_144, %c0_145, %c20_146, %c1_147] {strides = array<i32: 1, 1, 1, 2>} : memref<1x4x32x32xf32, #tpu.memory_space<vmem>>, vector<1x4x1x16xf32>
    %168 = vector.shape_cast %167 : vector<1x4x1x16xf32> to vector<4x16xf32>
    %169 = vector.shape_cast %166 : vector<4x16xf32> to vector<1x4x1x16xf32>
    tpu.strided_store %arg5[%c0_144, %c0_145, %c20_146, %c1_147], %169 {strides = array<i32: 1, 1, 1, 2>} : memref<1x4x32x32xf32, #tpu.memory_space<vmem>>, vector<1x4x1x16xf32>
    %170 = vector.extract_strided_slice %125 {offsets = [0, 176], sizes = [4, 16], strides = [1, 1]} : vector<4x256xf32> to vector<4x16xf32>
    %c0_148 = arith.constant 0 : index
    %c0_149 = arith.constant 0 : index
    %c22_150 = arith.constant 22 : index
    %c1_151 = arith.constant 1 : index
    %171 = tpu.strided_load %arg5[%c0_148, %c0_149, %c22_150, %c1_151] {strides = array<i32: 1, 1, 1, 2>} : memref<1x4x32x32xf32, #tpu.memory_space<vmem>>, vector<1x4x1x16xf32>
    %172 = vector.shape_cast %171 : vector<1x4x1x16xf32> to vector<4x16xf32>
    %173 = vector.shape_cast %170 : vector<4x16xf32> to vector<1x4x1x16xf32>
    tpu.strided_store %arg5[%c0_148, %c0_149, %c22_150, %c1_151], %173 {strides = array<i32: 1, 1, 1, 2>} : memref<1x4x32x32xf32, #tpu.memory_space<vmem>>, vector<1x4x1x16xf32>
    %174 = vector.extract_strided_slice %125 {offsets = [0, 192], sizes = [4, 16], strides = [1, 1]} : vector<4x256xf32> to vector<4x16xf32>
    %c0_152 = arith.constant 0 : index
    %c0_153 = arith.constant 0 : index
    %c24_154 = arith.constant 24 : index
    %c1_155 = arith.constant 1 : index
    %175 = tpu.strided_load %arg5[%c0_152, %c0_153, %c24_154, %c1_155] {strides = array<i32: 1, 1, 1, 2>} : memref<1x4x32x32xf32, #tpu.memory_space<vmem>>, vector<1x4x1x16xf32>
    %176 = vector.shape_cast %175 : vector<1x4x1x16xf32> to vector<4x16xf32>
    %177 = vector.shape_cast %174 : vector<4x16xf32> to vector<1x4x1x16xf32>
    tpu.strided_store %arg5[%c0_152, %c0_153, %c24_154, %c1_155], %177 {strides = array<i32: 1, 1, 1, 2>} : memref<1x4x32x32xf32, #tpu.memory_space<vmem>>, vector<1x4x1x16xf32>
    %178 = vector.extract_strided_slice %125 {offsets = [0, 208], sizes = [4, 16], strides = [1, 1]} : vector<4x256xf32> to vector<4x16xf32>
    %c0_156 = arith.constant 0 : index
    %c0_157 = arith.constant 0 : index
    %c26_158 = arith.constant 26 : index
    %c1_159 = arith.constant 1 : index
    %179 = tpu.strided_load %arg5[%c0_156, %c0_157, %c26_158, %c1_159] {strides = array<i32: 1, 1, 1, 2>} : memref<1x4x32x32xf32, #tpu.memory_space<vmem>>, vector<1x4x1x16xf32>
    %180 = vector.shape_cast %179 : vector<1x4x1x16xf32> to vector<4x16xf32>
    %181 = vector.shape_cast %178 : vector<4x16xf32> to vector<1x4x1x16xf32>
    tpu.strided_store %arg5[%c0_156, %c0_157, %c26_158, %c1_159], %181 {strides = array<i32: 1, 1, 1, 2>} : memref<1x4x32x32xf32, #tpu.memory_space<vmem>>, vector<1x4x1x16xf32>
    %182 = vector.extract_strided_slice %125 {offsets = [0, 224], sizes = [4, 16], strides = [1, 1]} : vector<4x256xf32> to vector<4x16xf32>
    %c0_160 = arith.constant 0 : index
    %c0_161 = arith.constant 0 : index
    %c28_162 = arith.constant 28 : index
    %c1_163 = arith.constant 1 : index
    %183 = tpu.strided_load %arg5[%c0_160, %c0_161, %c28_162, %c1_163] {strides = array<i32: 1, 1, 1, 2>} : memref<1x4x32x32xf32, #tpu.memory_space<vmem>>, vector<1x4x1x16xf32>
    %184 = vector.shape_cast %183 : vector<1x4x1x16xf32> to vector<4x16xf32>
    %185 = vector.shape_cast %182 : vector<4x16xf32> to vector<1x4x1x16xf32>
    tpu.strided_store %arg5[%c0_160, %c0_161, %c28_162, %c1_163], %185 {strides = array<i32: 1, 1, 1, 2>} : memref<1x4x32x32xf32, #tpu.memory_space<vmem>>, vector<1x4x1x16xf32>
    %186 = vector.extract_strided_slice %125 {offsets = [0, 240], sizes = [4, 16], strides = [1, 1]} : vector<4x256xf32> to vector<4x16xf32>
    %c0_164 = arith.constant 0 : index
    %c0_165 = arith.constant 0 : index
    %c30_166 = arith.constant 30 : index
    %c1_167 = arith.constant 1 : index
    %187 = tpu.strided_load %arg5[%c0_164, %c0_165, %c30_166, %c1_167] {strides = array<i32: 1, 1, 1, 2>} : memref<1x4x32x32xf32, #tpu.memory_space<vmem>>, vector<1x4x1x16xf32>
    %188 = vector.shape_cast %187 : vector<1x4x1x16xf32> to vector<4x16xf32>
    %189 = vector.shape_cast %186 : vector<4x16xf32> to vector<1x4x1x16xf32>
    tpu.strided_store %arg5[%c0_164, %c0_165, %c30_166, %c1_167], %189 {strides = array<i32: 1, 1, 1, 2>} : memref<1x4x32x32xf32, #tpu.memory_space<vmem>>, vector<1x4x1x16xf32>
    %190 = vector.extract_strided_slice %59 {offsets = [8, 0], sizes = [4, 256], strides = [1, 1]} : vector<16x256xf32> to vector<4x256xf32>
    %191 = vector.extract_strided_slice %190 {offsets = [0, 0], sizes = [4, 16], strides = [1, 1]} : vector<4x256xf32> to vector<4x16xf32>
    %c0_168 = arith.constant 0 : index
    %c0_169 = arith.constant 0 : index
    %c1_170 = arith.constant 1 : index
    %c0_171 = arith.constant 0 : index
    %192 = tpu.strided_load %arg5[%c0_168, %c0_169, %c1_170, %c0_171] {strides = array<i32: 1, 1, 1, 2>} : memref<1x4x32x32xf32, #tpu.memory_space<vmem>>, vector<1x4x1x16xf32>
    %193 = vector.shape_cast %192 : vector<1x4x1x16xf32> to vector<4x16xf32>
    %194 = vector.shape_cast %191 : vector<4x16xf32> to vector<1x4x1x16xf32>
    tpu.strided_store %arg5[%c0_168, %c0_169, %c1_170, %c0_171], %194 {strides = array<i32: 1, 1, 1, 2>} : memref<1x4x32x32xf32, #tpu.memory_space<vmem>>, vector<1x4x1x16xf32>
    %195 = vector.extract_strided_slice %190 {offsets = [0, 16], sizes = [4, 16], strides = [1, 1]} : vector<4x256xf32> to vector<4x16xf32>
    %c0_172 = arith.constant 0 : index
    %c0_173 = arith.constant 0 : index
    %c3_174 = arith.constant 3 : index
    %c0_175 = arith.constant 0 : index
    %196 = tpu.strided_load %arg5[%c0_172, %c0_173, %c3_174, %c0_175] {strides = array<i32: 1, 1, 1, 2>} : memref<1x4x32x32xf32, #tpu.memory_space<vmem>>, vector<1x4x1x16xf32>
    %197 = vector.shape_cast %196 : vector<1x4x1x16xf32> to vector<4x16xf32>
    %198 = vector.shape_cast %195 : vector<4x16xf32> to vector<1x4x1x16xf32>
    tpu.strided_store %arg5[%c0_172, %c0_173, %c3_174, %c0_175], %198 {strides = array<i32: 1, 1, 1, 2>} : memref<1x4x32x32xf32, #tpu.memory_space<vmem>>, vector<1x4x1x16xf32>
    %199 = vector.extract_strided_slice %190 {offsets = [0, 32], sizes = [4, 16], strides = [1, 1]} : vector<4x256xf32> to vector<4x16xf32>
    %c0_176 = arith.constant 0 : index
    %c0_177 = arith.constant 0 : index
    %c5_178 = arith.constant 5 : index
    %c0_179 = arith.constant 0 : index
    %200 = tpu.strided_load %arg5[%c0_176, %c0_177, %c5_178, %c0_179] {strides = array<i32: 1, 1, 1, 2>} : memref<1x4x32x32xf32, #tpu.memory_space<vmem>>, vector<1x4x1x16xf32>
    %201 = vector.shape_cast %200 : vector<1x4x1x16xf32> to vector<4x16xf32>
    %202 = vector.shape_cast %199 : vector<4x16xf32> to vector<1x4x1x16xf32>
    tpu.strided_store %arg5[%c0_176, %c0_177, %c5_178, %c0_179], %202 {strides = array<i32: 1, 1, 1, 2>} : memref<1x4x32x32xf32, #tpu.memory_space<vmem>>, vector<1x4x1x16xf32>
    %203 = vector.extract_strided_slice %190 {offsets = [0, 48], sizes = [4, 16], strides = [1, 1]} : vector<4x256xf32> to vector<4x16xf32>
    %c0_180 = arith.constant 0 : index
    %c0_181 = arith.constant 0 : index
    %c7_182 = arith.constant 7 : index
    %c0_183 = arith.constant 0 : index
    %204 = tpu.strided_load %arg5[%c0_180, %c0_181, %c7_182, %c0_183] {strides = array<i32: 1, 1, 1, 2>} : memref<1x4x32x32xf32, #tpu.memory_space<vmem>>, vector<1x4x1x16xf32>
    %205 = vector.shape_cast %204 : vector<1x4x1x16xf32> to vector<4x16xf32>
    %206 = vector.shape_cast %203 : vector<4x16xf32> to vector<1x4x1x16xf32>
    tpu.strided_store %arg5[%c0_180, %c0_181, %c7_182, %c0_183], %206 {strides = array<i32: 1, 1, 1, 2>} : memref<1x4x32x32xf32, #tpu.memory_space<vmem>>, vector<1x4x1x16xf32>
    %207 = vector.extract_strided_slice %190 {offsets = [0, 64], sizes = [4, 16], strides = [1, 1]} : vector<4x256xf32> to vector<4x16xf32>
    %c0_184 = arith.constant 0 : index
    %c0_185 = arith.constant 0 : index
    %c9 = arith.constant 9 : index
    %c0_186 = arith.constant 0 : index
    %208 = tpu.strided_load %arg5[%c0_184, %c0_185, %c9, %c0_186] {strides = array<i32: 1, 1, 1, 2>} : memref<1x4x32x32xf32, #tpu.memory_space<vmem>>, vector<1x4x1x16xf32>
    %209 = vector.shape_cast %208 : vector<1x4x1x16xf32> to vector<4x16xf32>
    %210 = vector.shape_cast %207 : vector<4x16xf32> to vector<1x4x1x16xf32>
    tpu.strided_store %arg5[%c0_184, %c0_185, %c9, %c0_186], %210 {strides = array<i32: 1, 1, 1, 2>} : memref<1x4x32x32xf32, #tpu.memory_space<vmem>>, vector<1x4x1x16xf32>
    %211 = vector.extract_strided_slice %190 {offsets = [0, 80], sizes = [4, 16], strides = [1, 1]} : vector<4x256xf32> to vector<4x16xf32>
    %c0_187 = arith.constant 0 : index
    %c0_188 = arith.constant 0 : index
    %c11 = arith.constant 11 : index
    %c0_189 = arith.constant 0 : index
    %212 = tpu.strided_load %arg5[%c0_187, %c0_188, %c11, %c0_189] {strides = array<i32: 1, 1, 1, 2>} : memref<1x4x32x32xf32, #tpu.memory_space<vmem>>, vector<1x4x1x16xf32>
    %213 = vector.shape_cast %212 : vector<1x4x1x16xf32> to vector<4x16xf32>
    %214 = vector.shape_cast %211 : vector<4x16xf32> to vector<1x4x1x16xf32>
    tpu.strided_store %arg5[%c0_187, %c0_188, %c11, %c0_189], %214 {strides = array<i32: 1, 1, 1, 2>} : memref<1x4x32x32xf32, #tpu.memory_space<vmem>>, vector<1x4x1x16xf32>
    %215 = vector.extract_strided_slice %190 {offsets = [0, 96], sizes = [4, 16], strides = [1, 1]} : vector<4x256xf32> to vector<4x16xf32>
    %c0_190 = arith.constant 0 : index
    %c0_191 = arith.constant 0 : index
    %c13 = arith.constant 13 : index
    %c0_192 = arith.constant 0 : index
    %216 = tpu.strided_load %arg5[%c0_190, %c0_191, %c13, %c0_192] {strides = array<i32: 1, 1, 1, 2>} : memref<1x4x32x32xf32, #tpu.memory_space<vmem>>, vector<1x4x1x16xf32>
    %217 = vector.shape_cast %216 : vector<1x4x1x16xf32> to vector<4x16xf32>
    %218 = vector.shape_cast %215 : vector<4x16xf32> to vector<1x4x1x16xf32>
    tpu.strided_store %arg5[%c0_190, %c0_191, %c13, %c0_192], %218 {strides = array<i32: 1, 1, 1, 2>} : memref<1x4x32x32xf32, #tpu.memory_space<vmem>>, vector<1x4x1x16xf32>
    %219 = vector.extract_strided_slice %190 {offsets = [0, 112], sizes = [4, 16], strides = [1, 1]} : vector<4x256xf32> to vector<4x16xf32>
    %c0_193 = arith.constant 0 : index
    %c0_194 = arith.constant 0 : index
    %c15 = arith.constant 15 : index
    %c0_195 = arith.constant 0 : index
    %220 = tpu.strided_load %arg5[%c0_193, %c0_194, %c15, %c0_195] {strides = array<i32: 1, 1, 1, 2>} : memref<1x4x32x32xf32, #tpu.memory_space<vmem>>, vector<1x4x1x16xf32>
    %221 = vector.shape_cast %220 : vector<1x4x1x16xf32> to vector<4x16xf32>
    %222 = vector.shape_cast %219 : vector<4x16xf32> to vector<1x4x1x16xf32>
    tpu.strided_store %arg5[%c0_193, %c0_194, %c15, %c0_195], %222 {strides = array<i32: 1, 1, 1, 2>} : memref<1x4x32x32xf32, #tpu.memory_space<vmem>>, vector<1x4x1x16xf32>
    %223 = vector.extract_strided_slice %190 {offsets = [0, 128], sizes = [4, 16], strides = [1, 1]} : vector<4x256xf32> to vector<4x16xf32>
    %c0_196 = arith.constant 0 : index
    %c0_197 = arith.constant 0 : index
    %c17 = arith.constant 17 : index
    %c0_198 = arith.constant 0 : index
    %224 = tpu.strided_load %arg5[%c0_196, %c0_197, %c17, %c0_198] {strides = array<i32: 1, 1, 1, 2>} : memref<1x4x32x32xf32, #tpu.memory_space<vmem>>, vector<1x4x1x16xf32>
    %225 = vector.shape_cast %224 : vector<1x4x1x16xf32> to vector<4x16xf32>
    %226 = vector.shape_cast %223 : vector<4x16xf32> to vector<1x4x1x16xf32>
    tpu.strided_store %arg5[%c0_196, %c0_197, %c17, %c0_198], %226 {strides = array<i32: 1, 1, 1, 2>} : memref<1x4x32x32xf32, #tpu.memory_space<vmem>>, vector<1x4x1x16xf32>
    %227 = vector.extract_strided_slice %190 {offsets = [0, 144], sizes = [4, 16], strides = [1, 1]} : vector<4x256xf32> to vector<4x16xf32>
    %c0_199 = arith.constant 0 : index
    %c0_200 = arith.constant 0 : index
    %c19 = arith.constant 19 : index
    %c0_201 = arith.constant 0 : index
    %228 = tpu.strided_load %arg5[%c0_199, %c0_200, %c19, %c0_201] {strides = array<i32: 1, 1, 1, 2>} : memref<1x4x32x32xf32, #tpu.memory_space<vmem>>, vector<1x4x1x16xf32>
    %229 = vector.shape_cast %228 : vector<1x4x1x16xf32> to vector<4x16xf32>
    %230 = vector.shape_cast %227 : vector<4x16xf32> to vector<1x4x1x16xf32>
    tpu.strided_store %arg5[%c0_199, %c0_200, %c19, %c0_201], %230 {strides = array<i32: 1, 1, 1, 2>} : memref<1x4x32x32xf32, #tpu.memory_space<vmem>>, vector<1x4x1x16xf32>
    %231 = vector.extract_strided_slice %190 {offsets = [0, 160], sizes = [4, 16], strides = [1, 1]} : vector<4x256xf32> to vector<4x16xf32>
    %c0_202 = arith.constant 0 : index
    %c0_203 = arith.constant 0 : index
    %c21 = arith.constant 21 : index
    %c0_204 = arith.constant 0 : index
    %232 = tpu.strided_load %arg5[%c0_202, %c0_203, %c21, %c0_204] {strides = array<i32: 1, 1, 1, 2>} : memref<1x4x32x32xf32, #tpu.memory_space<vmem>>, vector<1x4x1x16xf32>
    %233 = vector.shape_cast %232 : vector<1x4x1x16xf32> to vector<4x16xf32>
    %234 = vector.shape_cast %231 : vector<4x16xf32> to vector<1x4x1x16xf32>
    tpu.strided_store %arg5[%c0_202, %c0_203, %c21, %c0_204], %234 {strides = array<i32: 1, 1, 1, 2>} : memref<1x4x32x32xf32, #tpu.memory_space<vmem>>, vector<1x4x1x16xf32>
    %235 = vector.extract_strided_slice %190 {offsets = [0, 176], sizes = [4, 16], strides = [1, 1]} : vector<4x256xf32> to vector<4x16xf32>
    %c0_205 = arith.constant 0 : index
    %c0_206 = arith.constant 0 : index
    %c23 = arith.constant 23 : index
    %c0_207 = arith.constant 0 : index
    %236 = tpu.strided_load %arg5[%c0_205, %c0_206, %c23, %c0_207] {strides = array<i32: 1, 1, 1, 2>} : memref<1x4x32x32xf32, #tpu.memory_space<vmem>>, vector<1x4x1x16xf32>
    %237 = vector.shape_cast %236 : vector<1x4x1x16xf32> to vector<4x16xf32>
    %238 = vector.shape_cast %235 : vector<4x16xf32> to vector<1x4x1x16xf32>
    tpu.strided_store %arg5[%c0_205, %c0_206, %c23, %c0_207], %238 {strides = array<i32: 1, 1, 1, 2>} : memref<1x4x32x32xf32, #tpu.memory_space<vmem>>, vector<1x4x1x16xf32>
    %239 = vector.extract_strided_slice %190 {offsets = [0, 192], sizes = [4, 16], strides = [1, 1]} : vector<4x256xf32> to vector<4x16xf32>
    %c0_208 = arith.constant 0 : index
    %c0_209 = arith.constant 0 : index
    %c25 = arith.constant 25 : index
    %c0_210 = arith.constant 0 : index
    %240 = tpu.strided_load %arg5[%c0_208, %c0_209, %c25, %c0_210] {strides = array<i32: 1, 1, 1, 2>} : memref<1x4x32x32xf32, #tpu.memory_space<vmem>>, vector<1x4x1x16xf32>
    %241 = vector.shape_cast %240 : vector<1x4x1x16xf32> to vector<4x16xf32>
    %242 = vector.shape_cast %239 : vector<4x16xf32> to vector<1x4x1x16xf32>
    tpu.strided_store %arg5[%c0_208, %c0_209, %c25, %c0_210], %242 {strides = array<i32: 1, 1, 1, 2>} : memref<1x4x32x32xf32, #tpu.memory_space<vmem>>, vector<1x4x1x16xf32>
    %243 = vector.extract_strided_slice %190 {offsets = [0, 208], sizes = [4, 16], strides = [1, 1]} : vector<4x256xf32> to vector<4x16xf32>
    %c0_211 = arith.constant 0 : index
    %c0_212 = arith.constant 0 : index
    %c27 = arith.constant 27 : index
    %c0_213 = arith.constant 0 : index
    %244 = tpu.strided_load %arg5[%c0_211, %c0_212, %c27, %c0_213] {strides = array<i32: 1, 1, 1, 2>} : memref<1x4x32x32xf32, #tpu.memory_space<vmem>>, vector<1x4x1x16xf32>
    %245 = vector.shape_cast %244 : vector<1x4x1x16xf32> to vector<4x16xf32>
    %246 = vector.shape_cast %243 : vector<4x16xf32> to vector<1x4x1x16xf32>
    tpu.strided_store %arg5[%c0_211, %c0_212, %c27, %c0_213], %246 {strides = array<i32: 1, 1, 1, 2>} : memref<1x4x32x32xf32, #tpu.memory_space<vmem>>, vector<1x4x1x16xf32>
    %247 = vector.extract_strided_slice %190 {offsets = [0, 224], sizes = [4, 16], strides = [1, 1]} : vector<4x256xf32> to vector<4x16xf32>
    %c0_214 = arith.constant 0 : index
    %c0_215 = arith.constant 0 : index
    %c29 = arith.constant 29 : index
    %c0_216 = arith.constant 0 : index
    %248 = tpu.strided_load %arg5[%c0_214, %c0_215, %c29, %c0_216] {strides = array<i32: 1, 1, 1, 2>} : memref<1x4x32x32xf32, #tpu.memory_space<vmem>>, vector<1x4x1x16xf32>
    %249 = vector.shape_cast %248 : vector<1x4x1x16xf32> to vector<4x16xf32>
    %250 = vector.shape_cast %247 : vector<4x16xf32> to vector<1x4x1x16xf32>
    tpu.strided_store %arg5[%c0_214, %c0_215, %c29, %c0_216], %250 {strides = array<i32: 1, 1, 1, 2>} : memref<1x4x32x32xf32, #tpu.memory_space<vmem>>, vector<1x4x1x16xf32>
    %251 = vector.extract_strided_slice %190 {offsets = [0, 240], sizes = [4, 16], strides = [1, 1]} : vector<4x256xf32> to vector<4x16xf32>
    %c0_217 = arith.constant 0 : index
    %c0_218 = arith.constant 0 : index
    %c31 = arith.constant 31 : index
    %c0_219 = arith.constant 0 : index
    %252 = tpu.strided_load %arg5[%c0_217, %c0_218, %c31, %c0_219] {strides = array<i32: 1, 1, 1, 2>} : memref<1x4x32x32xf32, #tpu.memory_space<vmem>>, vector<1x4x1x16xf32>
    %253 = vector.shape_cast %252 : vector<1x4x1x16xf32> to vector<4x16xf32>
    %254 = vector.shape_cast %251 : vector<4x16xf32> to vector<1x4x1x16xf32>
    tpu.strided_store %arg5[%c0_217, %c0_218, %c31, %c0_219], %254 {strides = array<i32: 1, 1, 1, 2>} : memref<1x4x32x32xf32, #tpu.memory_space<vmem>>, vector<1x4x1x16xf32>
    %255 = vector.extract_strided_slice %59 {offsets = [12, 0], sizes = [4, 256], strides = [1, 1]} : vector<16x256xf32> to vector<4x256xf32>
    %256 = vector.extract_strided_slice %255 {offsets = [0, 0], sizes = [4, 16], strides = [1, 1]} : vector<4x256xf32> to vector<4x16xf32>
    %c0_220 = arith.constant 0 : index
    %c0_221 = arith.constant 0 : index
    %c1_222 = arith.constant 1 : index
    %c1_223 = arith.constant 1 : index
    %257 = tpu.strided_load %arg5[%c0_220, %c0_221, %c1_222, %c1_223] {strides = array<i32: 1, 1, 1, 2>} : memref<1x4x32x32xf32, #tpu.memory_space<vmem>>, vector<1x4x1x16xf32>
    %258 = vector.shape_cast %257 : vector<1x4x1x16xf32> to vector<4x16xf32>
    %259 = vector.shape_cast %256 : vector<4x16xf32> to vector<1x4x1x16xf32>
    tpu.strided_store %arg5[%c0_220, %c0_221, %c1_222, %c1_223], %259 {strides = array<i32: 1, 1, 1, 2>} : memref<1x4x32x32xf32, #tpu.memory_space<vmem>>, vector<1x4x1x16xf32>
    %260 = vector.extract_strided_slice %255 {offsets = [0, 16], sizes = [4, 16], strides = [1, 1]} : vector<4x256xf32> to vector<4x16xf32>
    %c0_224 = arith.constant 0 : index
    %c0_225 = arith.constant 0 : index
    %c3_226 = arith.constant 3 : index
    %c1_227 = arith.constant 1 : index
    %261 = tpu.strided_load %arg5[%c0_224, %c0_225, %c3_226, %c1_227] {strides = array<i32: 1, 1, 1, 2>} : memref<1x4x32x32xf32, #tpu.memory_space<vmem>>, vector<1x4x1x16xf32>
    %262 = vector.shape_cast %261 : vector<1x4x1x16xf32> to vector<4x16xf32>
    %263 = vector.shape_cast %260 : vector<4x16xf32> to vector<1x4x1x16xf32>
    tpu.strided_store %arg5[%c0_224, %c0_225, %c3_226, %c1_227], %263 {strides = array<i32: 1, 1, 1, 2>} : memref<1x4x32x32xf32, #tpu.memory_space<vmem>>, vector<1x4x1x16xf32>
    %264 = vector.extract_strided_slice %255 {offsets = [0, 32], sizes = [4, 16], strides = [1, 1]} : vector<4x256xf32> to vector<4x16xf32>
    %c0_228 = arith.constant 0 : index
    %c0_229 = arith.constant 0 : index
    %c5_230 = arith.constant 5 : index
    %c1_231 = arith.constant 1 : index
    %265 = tpu.strided_load %arg5[%c0_228, %c0_229, %c5_230, %c1_231] {strides = array<i32: 1, 1, 1, 2>} : memref<1x4x32x32xf32, #tpu.memory_space<vmem>>, vector<1x4x1x16xf32>
    %266 = vector.shape_cast %265 : vector<1x4x1x16xf32> to vector<4x16xf32>
    %267 = vector.shape_cast %264 : vector<4x16xf32> to vector<1x4x1x16xf32>
    tpu.strided_store %arg5[%c0_228, %c0_229, %c5_230, %c1_231], %267 {strides = array<i32: 1, 1, 1, 2>} : memref<1x4x32x32xf32, #tpu.memory_space<vmem>>, vector<1x4x1x16xf32>
    %268 = vector.extract_strided_slice %255 {offsets = [0, 48], sizes = [4, 16], strides = [1, 1]} : vector<4x256xf32> to vector<4x16xf32>
    %c0_232 = arith.constant 0 : index
    %c0_233 = arith.constant 0 : index
    %c7_234 = arith.constant 7 : index
    %c1_235 = arith.constant 1 : index
    %269 = tpu.strided_load %arg5[%c0_232, %c0_233, %c7_234, %c1_235] {strides = array<i32: 1, 1, 1, 2>} : memref<1x4x32x32xf32, #tpu.memory_space<vmem>>, vector<1x4x1x16xf32>
    %270 = vector.shape_cast %269 : vector<1x4x1x16xf32> to vector<4x16xf32>
    %271 = vector.shape_cast %268 : vector<4x16xf32> to vector<1x4x1x16xf32>
    tpu.strided_store %arg5[%c0_232, %c0_233, %c7_234, %c1_235], %271 {strides = array<i32: 1, 1, 1, 2>} : memref<1x4x32x32xf32, #tpu.memory_space<vmem>>, vector<1x4x1x16xf32>
    %272 = vector.extract_strided_slice %255 {offsets = [0, 64], sizes = [4, 16], strides = [1, 1]} : vector<4x256xf32> to vector<4x16xf32>
    %c0_236 = arith.constant 0 : index
    %c0_237 = arith.constant 0 : index
    %c9_238 = arith.constant 9 : index
    %c1_239 = arith.constant 1 : index
    %273 = tpu.strided_load %arg5[%c0_236, %c0_237, %c9_238, %c1_239] {strides = array<i32: 1, 1, 1, 2>} : memref<1x4x32x32xf32, #tpu.memory_space<vmem>>, vector<1x4x1x16xf32>
    %274 = vector.shape_cast %273 : vector<1x4x1x16xf32> to vector<4x16xf32>
    %275 = vector.shape_cast %272 : vector<4x16xf32> to vector<1x4x1x16xf32>
    tpu.strided_store %arg5[%c0_236, %c0_237, %c9_238, %c1_239], %275 {strides = array<i32: 1, 1, 1, 2>} : memref<1x4x32x32xf32, #tpu.memory_space<vmem>>, vector<1x4x1x16xf32>
    %276 = vector.extract_strided_slice %255 {offsets = [0, 80], sizes = [4, 16], strides = [1, 1]} : vector<4x256xf32> to vector<4x16xf32>
    %c0_240 = arith.constant 0 : index
    %c0_241 = arith.constant 0 : index
    %c11_242 = arith.constant 11 : index
    %c1_243 = arith.constant 1 : index
    %277 = tpu.strided_load %arg5[%c0_240, %c0_241, %c11_242, %c1_243] {strides = array<i32: 1, 1, 1, 2>} : memref<1x4x32x32xf32, #tpu.memory_space<vmem>>, vector<1x4x1x16xf32>
    %278 = vector.shape_cast %277 : vector<1x4x1x16xf32> to vector<4x16xf32>
    %279 = vector.shape_cast %276 : vector<4x16xf32> to vector<1x4x1x16xf32>
    tpu.strided_store %arg5[%c0_240, %c0_241, %c11_242, %c1_243], %279 {strides = array<i32: 1, 1, 1, 2>} : memref<1x4x32x32xf32, #tpu.memory_space<vmem>>, vector<1x4x1x16xf32>
    %280 = vector.extract_strided_slice %255 {offsets = [0, 96], sizes = [4, 16], strides = [1, 1]} : vector<4x256xf32> to vector<4x16xf32>
    %c0_244 = arith.constant 0 : index
    %c0_245 = arith.constant 0 : index
    %c13_246 = arith.constant 13 : index
    %c1_247 = arith.constant 1 : index
    %281 = tpu.strided_load %arg5[%c0_244, %c0_245, %c13_246, %c1_247] {strides = array<i32: 1, 1, 1, 2>} : memref<1x4x32x32xf32, #tpu.memory_space<vmem>>, vector<1x4x1x16xf32>
    %282 = vector.shape_cast %281 : vector<1x4x1x16xf32> to vector<4x16xf32>
    %283 = vector.shape_cast %280 : vector<4x16xf32> to vector<1x4x1x16xf32>
    tpu.strided_store %arg5[%c0_244, %c0_245, %c13_246, %c1_247], %283 {strides = array<i32: 1, 1, 1, 2>} : memref<1x4x32x32xf32, #tpu.memory_space<vmem>>, vector<1x4x1x16xf32>
    %284 = vector.extract_strided_slice %255 {offsets = [0, 112], sizes = [4, 16], strides = [1, 1]} : vector<4x256xf32> to vector<4x16xf32>
    %c0_248 = arith.constant 0 : index
    %c0_249 = arith.constant 0 : index
    %c15_250 = arith.constant 15 : index
    %c1_251 = arith.constant 1 : index
    %285 = tpu.strided_load %arg5[%c0_248, %c0_249, %c15_250, %c1_251] {strides = array<i32: 1, 1, 1, 2>} : memref<1x4x32x32xf32, #tpu.memory_space<vmem>>, vector<1x4x1x16xf32>
    %286 = vector.shape_cast %285 : vector<1x4x1x16xf32> to vector<4x16xf32>
    %287 = vector.shape_cast %284 : vector<4x16xf32> to vector<1x4x1x16xf32>
    tpu.strided_store %arg5[%c0_248, %c0_249, %c15_250, %c1_251], %287 {strides = array<i32: 1, 1, 1, 2>} : memref<1x4x32x32xf32, #tpu.memory_space<vmem>>, vector<1x4x1x16xf32>
    %288 = vector.extract_strided_slice %255 {offsets = [0, 128], sizes = [4, 16], strides = [1, 1]} : vector<4x256xf32> to vector<4x16xf32>
    %c0_252 = arith.constant 0 : index
    %c0_253 = arith.constant 0 : index
    %c17_254 = arith.constant 17 : index
    %c1_255 = arith.constant 1 : index
    %289 = tpu.strided_load %arg5[%c0_252, %c0_253, %c17_254, %c1_255] {strides = array<i32: 1, 1, 1, 2>} : memref<1x4x32x32xf32, #tpu.memory_space<vmem>>, vector<1x4x1x16xf32>
    %290 = vector.shape_cast %289 : vector<1x4x1x16xf32> to vector<4x16xf32>
    %291 = vector.shape_cast %288 : vector<4x16xf32> to vector<1x4x1x16xf32>
    tpu.strided_store %arg5[%c0_252, %c0_253, %c17_254, %c1_255], %291 {strides = array<i32: 1, 1, 1, 2>} : memref<1x4x32x32xf32, #tpu.memory_space<vmem>>, vector<1x4x1x16xf32>
    %292 = vector.extract_strided_slice %255 {offsets = [0, 144], sizes = [4, 16], strides = [1, 1]} : vector<4x256xf32> to vector<4x16xf32>
    %c0_256 = arith.constant 0 : index
    %c0_257 = arith.constant 0 : index
    %c19_258 = arith.constant 19 : index
    %c1_259 = arith.constant 1 : index
    %293 = tpu.strided_load %arg5[%c0_256, %c0_257, %c19_258, %c1_259] {strides = array<i32: 1, 1, 1, 2>} : memref<1x4x32x32xf32, #tpu.memory_space<vmem>>, vector<1x4x1x16xf32>
    %294 = vector.shape_cast %293 : vector<1x4x1x16xf32> to vector<4x16xf32>
    %295 = vector.shape_cast %292 : vector<4x16xf32> to vector<1x4x1x16xf32>
    tpu.strided_store %arg5[%c0_256, %c0_257, %c19_258, %c1_259], %295 {strides = array<i32: 1, 1, 1, 2>} : memref<1x4x32x32xf32, #tpu.memory_space<vmem>>, vector<1x4x1x16xf32>
    %296 = vector.extract_strided_slice %255 {offsets = [0, 160], sizes = [4, 16], strides = [1, 1]} : vector<4x256xf32> to vector<4x16xf32>
    %c0_260 = arith.constant 0 : index
    %c0_261 = arith.constant 0 : index
    %c21_262 = arith.constant 21 : index
    %c1_263 = arith.constant 1 : index
    %297 = tpu.strided_load %arg5[%c0_260, %c0_261, %c21_262, %c1_263] {strides = array<i32: 1, 1, 1, 2>} : memref<1x4x32x32xf32, #tpu.memory_space<vmem>>, vector<1x4x1x16xf32>
    %298 = vector.shape_cast %297 : vector<1x4x1x16xf32> to vector<4x16xf32>
    %299 = vector.shape_cast %296 : vector<4x16xf32> to vector<1x4x1x16xf32>
    tpu.strided_store %arg5[%c0_260, %c0_261, %c21_262, %c1_263], %299 {strides = array<i32: 1, 1, 1, 2>} : memref<1x4x32x32xf32, #tpu.memory_space<vmem>>, vector<1x4x1x16xf32>
    %300 = vector.extract_strided_slice %255 {offsets = [0, 176], sizes = [4, 16], strides = [1, 1]} : vector<4x256xf32> to vector<4x16xf32>
    %c0_264 = arith.constant 0 : index
    %c0_265 = arith.constant 0 : index
    %c23_266 = arith.constant 23 : index
    %c1_267 = arith.constant 1 : index
    %301 = tpu.strided_load %arg5[%c0_264, %c0_265, %c23_266, %c1_267] {strides = array<i32: 1, 1, 1, 2>} : memref<1x4x32x32xf32, #tpu.memory_space<vmem>>, vector<1x4x1x16xf32>
    %302 = vector.shape_cast %301 : vector<1x4x1x16xf32> to vector<4x16xf32>
    %303 = vector.shape_cast %300 : vector<4x16xf32> to vector<1x4x1x16xf32>
    tpu.strided_store %arg5[%c0_264, %c0_265, %c23_266, %c1_267], %303 {strides = array<i32: 1, 1, 1, 2>} : memref<1x4x32x32xf32, #tpu.memory_space<vmem>>, vector<1x4x1x16xf32>
    %304 = vector.extract_strided_slice %255 {offsets = [0, 192], sizes = [4, 16], strides = [1, 1]} : vector<4x256xf32> to vector<4x16xf32>
    %c0_268 = arith.constant 0 : index
    %c0_269 = arith.constant 0 : index
    %c25_270 = arith.constant 25 : index
    %c1_271 = arith.constant 1 : index
    %305 = tpu.strided_load %arg5[%c0_268, %c0_269, %c25_270, %c1_271] {strides = array<i32: 1, 1, 1, 2>} : memref<1x4x32x32xf32, #tpu.memory_space<vmem>>, vector<1x4x1x16xf32>
    %306 = vector.shape_cast %305 : vector<1x4x1x16xf32> to vector<4x16xf32>
    %307 = vector.shape_cast %304 : vector<4x16xf32> to vector<1x4x1x16xf32>
    tpu.strided_store %arg5[%c0_268, %c0_269, %c25_270, %c1_271], %307 {strides = array<i32: 1, 1, 1, 2>} : memref<1x4x32x32xf32, #tpu.memory_space<vmem>>, vector<1x4x1x16xf32>
    %308 = vector.extract_strided_slice %255 {offsets = [0, 208], sizes = [4, 16], strides = [1, 1]} : vector<4x256xf32> to vector<4x16xf32>
    %c0_272 = arith.constant 0 : index
    %c0_273 = arith.constant 0 : index
    %c27_274 = arith.constant 27 : index
    %c1_275 = arith.constant 1 : index
    %309 = tpu.strided_load %arg5[%c0_272, %c0_273, %c27_274, %c1_275] {strides = array<i32: 1, 1, 1, 2>} : memref<1x4x32x32xf32, #tpu.memory_space<vmem>>, vector<1x4x1x16xf32>
    %310 = vector.shape_cast %309 : vector<1x4x1x16xf32> to vector<4x16xf32>
    %311 = vector.shape_cast %308 : vector<4x16xf32> to vector<1x4x1x16xf32>
    tpu.strided_store %arg5[%c0_272, %c0_273, %c27_274, %c1_275], %311 {strides = array<i32: 1, 1, 1, 2>} : memref<1x4x32x32xf32, #tpu.memory_space<vmem>>, vector<1x4x1x16xf32>
    %312 = vector.extract_strided_slice %255 {offsets = [0, 224], sizes = [4, 16], strides = [1, 1]} : vector<4x256xf32> to vector<4x16xf32>
    %c0_276 = arith.constant 0 : index
    %c0_277 = arith.constant 0 : index
    %c29_278 = arith.constant 29 : index
    %c1_279 = arith.constant 1 : index
    %313 = tpu.strided_load %arg5[%c0_276, %c0_277, %c29_278, %c1_279] {strides = array<i32: 1, 1, 1, 2>} : memref<1x4x32x32xf32, #tpu.memory_space<vmem>>, vector<1x4x1x16xf32>
    %314 = vector.shape_cast %313 : vector<1x4x1x16xf32> to vector<4x16xf32>
    %315 = vector.shape_cast %312 : vector<4x16xf32> to vector<1x4x1x16xf32>
    tpu.strided_store %arg5[%c0_276, %c0_277, %c29_278, %c1_279], %315 {strides = array<i32: 1, 1, 1, 2>} : memref<1x4x32x32xf32, #tpu.memory_space<vmem>>, vector<1x4x1x16xf32>
    %316 = vector.extract_strided_slice %255 {offsets = [0, 240], sizes = [4, 16], strides = [1, 1]} : vector<4x256xf32> to vector<4x16xf32>
    %c0_280 = arith.constant 0 : index
    %c0_281 = arith.constant 0 : index
    %c31_282 = arith.constant 31 : index
    %c1_283 = arith.constant 1 : index
    %317 = tpu.strided_load %arg5[%c0_280, %c0_281, %c31_282, %c1_283] {strides = array<i32: 1, 1, 1, 2>} : memref<1x4x32x32xf32, #tpu.memory_space<vmem>>, vector<1x4x1x16xf32>
    %318 = vector.shape_cast %317 : vector<1x4x1x16xf32> to vector<4x16xf32>
    %319 = vector.shape_cast %316 : vector<4x16xf32> to vector<1x4x1x16xf32>
    tpu.strided_store %arg5[%c0_280, %c0_281, %c31_282, %c1_283], %319 {strides = array<i32: 1, 1, 1, 2>} : memref<1x4x32x32xf32, #tpu.memory_space<vmem>>, vector<1x4x1x16xf32>
    return
  }
  func.func @transform_0(%arg0: i32) -> (i32, i32, i32) {
    %c0_i32 = arith.constant 0 : i32
    %c0_i32_0 = arith.constant 0 : i32
    %c0_i32_1 = arith.constant 0 : i32
    return %arg0, %c0_i32, %c0_i32_0 : i32, i32, i32
  }
  func.func @transform_1(%arg0: i32) -> (i32, i32) {
    %c0_i32 = arith.constant 0 : i32
    %c0_i32_0 = arith.constant 0 : i32
    %c0_i32_1 = arith.constant 0 : i32
    return %c0_i32, %c0_i32_0 : i32, i32
  }
  func.func @transform_2(%arg0: i32) -> (i32, i32) {
    %c0_i32 = arith.constant 0 : i32
    %c0_i32_0 = arith.constant 0 : i32
    %c0_i32_1 = arith.constant 0 : i32
    return %c0_i32, %c0_i32_0 : i32, i32
  }
  func.func @transform_3(%arg0: i32) -> i32 {
    %c0_i32 = arith.constant 0 : i32
    %c0_i32_0 = arith.constant 0 : i32
    return %c0_i32 : i32
  }
  func.func @transform_4(%arg0: i32) -> (i32, i32, i32, i32) {
    %c0_i32 = arith.constant 0 : i32
    %c0_i32_0 = arith.constant 0 : i32
    %c0_i32_1 = arith.constant 0 : i32
    %c0_i32_2 = arith.constant 0 : i32
    return %arg0, %c0_i32, %c0_i32_0, %c0_i32_1 : i32, i32, i32, i32
  }
}

module attributes {stable_mosaic.version = 11 : i64} {
  func.func @_conv_shuffle_prelu_kernel(%arg0: i32, %arg1: memref<1x4x256xf32, #tpu.memory_space<vmem>>, %arg2: memref<16x40xf32, #tpu.memory_space<vmem>>, %arg3: memref<9x256xf32, #tpu.memory_space<vmem>>, %arg4: memref<1xf32, #tpu.memory_space<smem>>, %arg5: memref<1x16x256xf32, #tpu.memory_space<vmem>>, %arg6: memref<4x512xf32, #tpu.memory_space<vmem>>, %arg7: memref<40x256xf32, #tpu.memory_space<vmem>>) attributes {dimension_semantics = [#tpu.dimension_semantics<parallel>], iteration_bounds = array<i64: 2>, scalar_prefetch = 0 : i64, scratch_operands = 2 : i64, tpu.core_type = #tpu.core_type<tc>, window_params = [{transform_indices = @transform_0, window_bounds = array<i64: 1, 4, 256>}, {pipeline_mode = #tpu.pipeline_mode<synchronous>, transform_indices = @transform_1, window_bounds = array<i64: 16, 40>}, {pipeline_mode = #tpu.pipeline_mode<synchronous>, transform_indices = @transform_2, window_bounds = array<i64: 9, 256>}, {transform_indices = @transform_3, window_bounds = array<i64: 1>}, {transform_indices = @transform_4, window_bounds = array<i64: 1, 16, 256>}]} {
    %cst = arith.constant 0.000000e+00 : f32
    %0 = vector.broadcast %cst : f32 to vector<4x128xf32>
    %c0 = arith.constant 0 : index
    %c0_0 = arith.constant 0 : index
    %1 = vector.load %arg6[%c0, %c0_0] : memref<4x512xf32, #tpu.memory_space<vmem>>, vector<4x128xf32>
    tpu.vector_store %arg6[%c0, %c0_0], %0 {strides = array<i32>} : memref<4x512xf32, #tpu.memory_space<vmem>>, vector<4x128xf32>,
    %cst_1 = arith.constant 0.000000e+00 : f32
    %2 = vector.broadcast %cst_1 : f32 to vector<4x128xf32>
    %c0_2 = arith.constant 0 : index
    %c384 = arith.constant 384 : index
    %3 = vector.load %arg6[%c0_2, %c384] : memref<4x512xf32, #tpu.memory_space<vmem>>, vector<4x128xf32>
    tpu.vector_store %arg6[%c0_2, %c384], %2 {strides = array<i32>} : memref<4x512xf32, #tpu.memory_space<vmem>>, vector<4x128xf32>,
    %cst_3 = arith.constant 1.000000e+00 : f32
    %4 = vector.broadcast %cst_3 : f32 to vector<4x256xf32>
    %c36 = arith.constant 36 : index
    %c0_4 = arith.constant 0 : index
    %5 = vector.load %arg7[%c36, %c0_4] : memref<40x256xf32, #tpu.memory_space<vmem>>, vector<4x256xf32>
    tpu.vector_store %arg7[%c36, %c0_4], %4 {strides = array<i32>} : memref<40x256xf32, #tpu.memory_space<vmem>>, vector<4x256xf32>,
    %c0_5 = arith.constant 0 : index
    %c0_6 = arith.constant 0 : index
    %c0_7 = arith.constant 0 : index
    %6 = vector.load %arg1[%c0_5, %c0_6, %c0_7] : memref<1x4x256xf32, #tpu.memory_space<vmem>>, vector<1x4x256xf32>
    %7 = vector.shape_cast %6 : vector<1x4x256xf32> to vector<4x256xf32>
    %c0_8 = arith.constant 0 : index
    %c128 = arith.constant 128 : index
    %8 = vector.load %arg6[%c0_8, %c128] : memref<4x512xf32, #tpu.memory_space<vmem>>, vector<4x256xf32>
    tpu.vector_store %arg6[%c0_8, %c128], %7 {strides = array<i32>} : memref<4x512xf32, #tpu.memory_space<vmem>>, vector<4x256xf32>,
    %c0_9 = arith.constant 0 : index
    %c111 = arith.constant 111 : index
    %9 = vector.load %arg6[%c0_9, %c111] : memref<4x512xf32, #tpu.memory_space<vmem>>, vector<4x256xf32>
    %c0_10 = arith.constant 0 : index
    %c0_11 = arith.constant 0 : index
    %10 = vector.load %arg3[%c0_10, %c0_11] : memref<9x256xf32, #tpu.memory_space<vmem>>, vector<1x256xf32>
    %11 = vector.broadcast %10 : vector<1x256xf32> to vector<4x256xf32>
    %12 = arith.mulf %9, %11 : vector<4x256xf32>
    %c0_12 = arith.constant 0 : index
    %c0_13 = arith.constant 0 : index
    %13 = vector.load %arg7[%c0_12, %c0_13] : memref<40x256xf32, #tpu.memory_space<vmem>>, vector<4x256xf32>
    tpu.vector_store %arg7[%c0_12, %c0_13], %12 {strides = array<i32>} : memref<40x256xf32, #tpu.memory_space<vmem>>, vector<4x256xf32>,
    %c0_14 = arith.constant 0 : index
    %c112 = arith.constant 112 : index
    %14 = vector.load %arg6[%c0_14, %c112] : memref<4x512xf32, #tpu.memory_space<vmem>>, vector<4x256xf32>
    %c1 = arith.constant 1 : index
    %c0_15 = arith.constant 0 : index
    %15 = vector.load %arg3[%c1, %c0_15] : memref<9x256xf32, #tpu.memory_space<vmem>>, vector<1x256xf32>
    %16 = vector.broadcast %15 : vector<1x256xf32> to vector<4x256xf32>
    %17 = arith.mulf %14, %16 : vector<4x256xf32>
    %c4 = arith.constant 4 : index
    %c0_16 = arith.constant 0 : index
    %18 = vector.load %arg7[%c4, %c0_16] : memref<40x256xf32, #tpu.memory_space<vmem>>, vector<4x256xf32>
    tpu.vector_store %arg7[%c4, %c0_16], %17 {strides = array<i32>} : memref<40x256xf32, #tpu.memory_space<vmem>>, vector<4x256xf32>,
    %c0_17 = arith.constant 0 : index
    %c113 = arith.constant 113 : index
    %19 = vector.load %arg6[%c0_17, %c113] : memref<4x512xf32, #tpu.memory_space<vmem>>, vector<4x256xf32>
    %c2 = arith.constant 2 : index
    %c0_18 = arith.constant 0 : index
    %20 = vector.load %arg3[%c2, %c0_18] : memref<9x256xf32, #tpu.memory_space<vmem>>, vector<1x256xf32>
    %21 = vector.broadcast %20 : vector<1x256xf32> to vector<4x256xf32>
    %22 = arith.mulf %19, %21 : vector<4x256xf32>
    %c8 = arith.constant 8 : index
    %c0_19 = arith.constant 0 : index
    %23 = vector.load %arg7[%c8, %c0_19] : memref<40x256xf32, #tpu.memory_space<vmem>>, vector<4x256xf32>
    tpu.vector_store %arg7[%c8, %c0_19], %22 {strides = array<i32>} : memref<40x256xf32, #tpu.memory_space<vmem>>, vector<4x256xf32>,
    %c0_20 = arith.constant 0 : index
    %c127 = arith.constant 127 : index
    %24 = vector.load %arg6[%c0_20, %c127] : memref<4x512xf32, #tpu.memory_space<vmem>>, vector<4x256xf32>
    %c3 = arith.constant 3 : index
    %c0_21 = arith.constant 0 : index
    %25 = vector.load %arg3[%c3, %c0_21] : memref<9x256xf32, #tpu.memory_space<vmem>>, vector<1x256xf32>
    %26 = vector.broadcast %25 : vector<1x256xf32> to vector<4x256xf32>
    %27 = arith.mulf %24, %26 : vector<4x256xf32>
    %c12 = arith.constant 12 : index
    %c0_22 = arith.constant 0 : index
    %28 = vector.load %arg7[%c12, %c0_22] : memref<40x256xf32, #tpu.memory_space<vmem>>, vector<4x256xf32>
    tpu.vector_store %arg7[%c12, %c0_22], %27 {strides = array<i32>} : memref<40x256xf32, #tpu.memory_space<vmem>>, vector<4x256xf32>,
    %c0_23 = arith.constant 0 : index
    %c128_24 = arith.constant 128 : index
    %29 = vector.load %arg6[%c0_23, %c128_24] : memref<4x512xf32, #tpu.memory_space<vmem>>, vector<4x256xf32>
    %c16 = arith.constant 16 : index
    %c0_25 = arith.constant 0 : index
    %30 = vector.load %arg7[%c16, %c0_25] : memref<40x256xf32, #tpu.memory_space<vmem>>, vector<4x256xf32>
    tpu.vector_store %arg7[%c16, %c0_25], %29 {strides = array<i32>} : memref<40x256xf32, #tpu.memory_space<vmem>>, vector<4x256xf32>,
    %c0_26 = arith.constant 0 : index
    %c129 = arith.constant 129 : index
    %31 = vector.load %arg6[%c0_26, %c129] : memref<4x512xf32, #tpu.memory_space<vmem>>, vector<4x256xf32>
    %c5 = arith.constant 5 : index
    %c0_27 = arith.constant 0 : index
    %32 = vector.load %arg3[%c5, %c0_27] : memref<9x256xf32, #tpu.memory_space<vmem>>, vector<1x256xf32>
    %33 = vector.broadcast %32 : vector<1x256xf32> to vector<4x256xf32>
    %34 = arith.mulf %31, %33 : vector<4x256xf32>
    %c20 = arith.constant 20 : index
    %c0_28 = arith.constant 0 : index
    %35 = vector.load %arg7[%c20, %c0_28] : memref<40x256xf32, #tpu.memory_space<vmem>>, vector<4x256xf32>
    tpu.vector_store %arg7[%c20, %c0_28], %34 {strides = array<i32>} : memref<40x256xf32, #tpu.memory_space<vmem>>, vector<4x256xf32>,
    %c0_29 = arith.constant 0 : index
    %c143 = arith.constant 143 : index
    %36 = vector.load %arg6[%c0_29, %c143] : memref<4x512xf32, #tpu.memory_space<vmem>>, vector<4x256xf32>
    %c6 = arith.constant 6 : index
    %c0_30 = arith.constant 0 : index
    %37 = vector.load %arg3[%c6, %c0_30] : memref<9x256xf32, #tpu.memory_space<vmem>>, vector<1x256xf32>
    %38 = vector.broadcast %37 : vector<1x256xf32> to vector<4x256xf32>
    %39 = arith.mulf %36, %38 : vector<4x256xf32>
    %c24 = arith.constant 24 : index
    %c0_31 = arith.constant 0 : index
    %40 = vector.load %arg7[%c24, %c0_31] : memref<40x256xf32, #tpu.memory_space<vmem>>, vector<4x256xf32>
    tpu.vector_store %arg7[%c24, %c0_31], %39 {strides = array<i32>} : memref<40x256xf32, #tpu.memory_space<vmem>>, vector<4x256xf32>,
    %c0_32 = arith.constant 0 : index
    %c144 = arith.constant 144 : index
    %41 = vector.load %arg6[%c0_32, %c144] : memref<4x512xf32, #tpu.memory_space<vmem>>, vector<4x256xf32>
    %c7 = arith.constant 7 : index
    %c0_33 = arith.constant 0 : index
    %42 = vector.load %arg3[%c7, %c0_33] : memref<9x256xf32, #tpu.memory_space<vmem>>, vector<1x256xf32>
    %43 = vector.broadcast %42 : vector<1x256xf32> to vector<4x256xf32>
    %44 = arith.mulf %41, %43 : vector<4x256xf32>
    %c28 = arith.constant 28 : index
    %c0_34 = arith.constant 0 : index
    %45 = vector.load %arg7[%c28, %c0_34] : memref<40x256xf32, #tpu.memory_space<vmem>>, vector<4x256xf32>
    tpu.vector_store %arg7[%c28, %c0_34], %44 {strides = array<i32>} : memref<40x256xf32, #tpu.memory_space<vmem>>, vector<4x256xf32>,
    %c0_35 = arith.constant 0 : index
    %c145 = arith.constant 145 : index
    %46 = vector.load %arg6[%c0_35, %c145] : memref<4x512xf32, #tpu.memory_space<vmem>>, vector<4x256xf32>
    %c8_36 = arith.constant 8 : index
    %c0_37 = arith.constant 0 : index
    %47 = vector.load %arg3[%c8_36, %c0_37] : memref<9x256xf32, #tpu.memory_space<vmem>>, vector<1x256xf32>
    %48 = vector.broadcast %47 : vector<1x256xf32> to vector<4x256xf32>
    %49 = arith.mulf %46, %48 : vector<4x256xf32>
    %c32 = arith.constant 32 : index
    %c0_38 = arith.constant 0 : index
    %50 = vector.load %arg7[%c32, %c0_38] : memref<40x256xf32, #tpu.memory_space<vmem>>, vector<4x256xf32>
    tpu.vector_store %arg7[%c32, %c0_38], %49 {strides = array<i32>} : memref<40x256xf32, #tpu.memory_space<vmem>>, vector<4x256xf32>,
    %c0_39 = arith.constant 0 : index
    %c0_40 = arith.constant 0 : index
    %51 = vector.load %arg2[%c0_39, %c0_40] : memref<16x40xf32, #tpu.memory_space<vmem>>, vector<16x40xf32>
    %c0_41 = arith.constant 0 : index
    %c0_42 = arith.constant 0 : index
    %52 = vector.load %arg7[%c0_41, %c0_42] : memref<40x256xf32, #tpu.memory_space<vmem>>, vector<40x256xf32>
    %cst_43 = arith.constant dense<0.000000e+00> : vector<16x256xf32>
    %53 = tpu.matmul %51, %52, %cst_43 {dimension_numbers = #tpu.dot_dimension_numbers<[1], [0], [0], [1], [0, 0, 1, 1], [], []>} : vector<16x40xf32>, vector<40x256xf32>, vector<16x256xf32> -> vector<16x256xf32>
    %c0_44 = arith.constant 0 : index
    %54 = memref.load %arg4[%c0_44] : memref<1xf32, #tpu.memory_space<smem>>
    %cst_45 = arith.constant 0.000000e+00 : f32
    %55 = vector.broadcast %cst_45 : f32 to vector<16x256xf32>
    %56 = arith.cmpf oge, %53, %55 : vector<16x256xf32>
    %57 = vector.broadcast %54 : f32 to vector<16x256xf32>
    %58 = arith.mulf %57, %53 : vector<16x256xf32>
    %59 = arith.select %56, %53, %58 : vector<16x256xi1>, vector<16x256xf32>
    %c0_46 = arith.constant 0 : index
    %c0_47 = arith.constant 0 : index
    %c0_48 = arith.constant 0 : index
    %60 = vector.load %arg5[%c0_46, %c0_47, %c0_48] : memref<1x16x256xf32, #tpu.memory_space<vmem>>, vector<1x16x256xf32>
    %61 = vector.shape_cast %60 : vector<1x16x256xf32> to vector<16x256xf32>
    %62 = vector.shape_cast %59 : vector<16x256xf32> to vector<1x16x256xf32>
    tpu.vector_store %arg5[%c0_46, %c0_47, %c0_48], %62 {strides = array<i32>} : memref<1x16x256xf32, #tpu.memory_space<vmem>>, vector<1x16x256xf32>,
    return
  }
  func.func @transform_0(%arg0: i32) -> (i32, i32, i32) {
    %c0_i32 = arith.constant 0 : i32
    %c0_i32_0 = arith.constant 0 : i32
    %c0_i32_1 = arith.constant 0 : i32
    return %arg0, %c0_i32, %c0_i32_0 : i32, i32, i32
  }
  func.func @transform_1(%arg0: i32) -> (i32, i32) {
    %c0_i32 = arith.constant 0 : i32
    %c0_i32_0 = arith.constant 0 : i32
    %c0_i32_1 = arith.constant 0 : i32
    return %c0_i32, %c0_i32_0 : i32, i32
  }
  func.func @transform_2(%arg0: i32) -> (i32, i32) {
    %c0_i32 = arith.constant 0 : i32
    %c0_i32_0 = arith.constant 0 : i32
    %c0_i32_1 = arith.constant 0 : i32
    return %c0_i32, %c0_i32_0 : i32, i32
  }
  func.func @transform_3(%arg0: i32) -> i32 {
    %c0_i32 = arith.constant 0 : i32
    %c0_i32_0 = arith.constant 0 : i32
    return %c0_i32 : i32
  }
  func.func @transform_4(%arg0: i32) -> (i32, i32, i32) {
    %c0_i32 = arith.constant 0 : i32
    %c0_i32_0 = arith.constant 0 : i32
    %c0_i32_1 = arith.constant 0 : i32
    return %arg0, %c0_i32, %c0_i32_0 : i32, i32, i32
  }
}

</mosaic_0001>

<bundles_post_ra>
// kernel: tpu_custom_call.1
= control target key start
LH: loop header
LB: loop body
LE: loop exit
PB: predicated region body
PF: predicated region fallthrough
CT: control target
= control target key end

     0   :  { %s1351_s0 = inlined_call_operand.hbm [shape: f32[2,4,256], index: 0, kind: input, shape index: {}]   ;;  %s1352_s1 = inlined_call_operand.hbm [shape: f32[16,40], index: 1, kind: input, shape index: {}]   ;;  %s1353_s2 = inlined_call_operand.hbm [shape: f32[9,256], index: 2, kind: input, shape index: {}]   ;;  %s1354_s3 = inlined_call_operand.<no memory space> [shape: f32[1], index: 3, kind: input, shape index: {}]   ;;  %s1355_s4 = inlined_call_operand.hbm [shape: f32[2,16,256], index: 4, kind: output, shape index: {}]  }
   0x1   :  { %9 = sst [smem:[#allocation4]] %s1354_s3 }
   0x2   :  { %10 = vsyncpa [#allocation6], 0 }
   0x3   :  { %12 = vsyncpa [#allocation6 + $0x1], 0 }
   0x4   :  { %13 = vsyncpa [#allocation9], 0 }
   0x5   :  { %14 = vsyncpa [#allocation7], 0 }
   0x6   :  { %16 = vsyncpa [#allocation7 + $0x1], 0  ;;  %s1095_s17 = smov 0   ;;  %s1097_s18 = smov 0  }
   0x7   :  { %s1099_s19 = smov 0   ;;  %s1101_s20 = smov 0  }
   0x8 LB: > { %s1116_s3 = sadd.s32 4294967295, %s1046_s20   ;;  %s783_s21 = sadd.s32 4294967294, %s1046_s20   ;;  %s1046_s20 = sphi %s1101_s20, %s1377_s20   ;;  %s1042_s19 = sphi %s1099_s19, %s1376_s19   ;;  %s1038_s18 = sphi %s1097_s18, %s1375_s18   ;;  %s1034_s17 = sphi %s1095_s17, %s1374_s17  }
   0x9   : > { %p42_p0 = scmp.ne.s32.totalorder %s1038_s18, %s1034_s17  ;;  %p1356_p1 = scmp.eq.s32.totalorder %s1116_s3, 0 }
   0xa   : > { %p135_p3 = scmp.eq.s32.totalorder %s783_s21, 1  ;;  %p784_p5 = scmp.ge.s32.totalorder %s1046_s20, 1 }
   0xb   : > { %p1125_p4 = por %p1356_p1, %p42_p0  ;;  %p142_p7 = scmp.lt.s32.totalorder %s1046_s20, 3 }
   0xc   : > { %p1130_p6 = por %p135_p3, %p42_p0  ;;  %s1048_s25 = smov [#allocation8]  }
   0xd   : > { %s1360_s22 = scalar_select %p1125_p4, 1, 0 }
   0xe   : > { %s1361_s23 = scalar_select %p1130_p6, 1, 0 }
   0xf   : > { %p1135_p8 = pnand %p784_p5, %p142_p7  ;;  %s154_s26 = sshll.u32 %s1048_s25, 4  ;;  %s155_s26 = int_to_ptr.vmem [resolvable:$true] %s154_s26 }
  0x10   : > { %s1049_s28 = smov [#allocation10]   ;;  %s909_s30 = scalar_lea.vmem %s155_s26, 256 }
  0x11   : > { %s1362_s24 = scalar_select %p1135_p8, 1, 0 }
  0x12   : > { %p827_p9 = pneg %p1135_p8  ;;  %s167_s29 = sshll.u32 %s1049_s28, 4  ;;  %s168_s29 = int_to_ptr.vmem [resolvable:$true] %s167_s29 }
  0x13   : > { %p910_p13 = scmp.ne.s32.totalorder %s155_s26, %s909_s30  ;;  %p917_p5 = scmp.lt.s32.totalorder %s155_s26, %s155_s26 }
  0x14   : > { %p1144_p11 = pnand %p827_p9, %p1356_p1  ;;  %p918_p7 = scmp.lt.s32.totalorder %s909_s30, %s909_s30 }
  0x16   : > { %p900_p12 = pneg %p1144_p11  ;;  %p919_p10 = por %p918_p7, %p917_p5 }
  0x18   : > { %p912_p0 = pnand %p910_p13, %p900_p12 }
  0x1a   : > { %p913_p3 = pneg %p912_p0 }
  0x1c   : > { %p920_p9 = pnand %p919_p10, %p913_p3 }
  0x1e   : > { %923 = shalt.err (!%p920_p9)
}
  0x1f   : > { %s1050_s5 = smov 128   ;;  %s1051_s6 = smov 8  }
  0x20   : > { %830 = dma.hbm_to_vmem [thread:$0]  (!%p1144_p11), %s1352_s1, 256, %s155_s26, [#allocation9], %s1050_s5, %s1050_s5, %s1051_s6  }
  0x21   : > { %s935_s9 = scalar_lea.vmem %s168_s29, 512  ;;  %p943_p2 = scmp.lt.s32.totalorder %s168_s29, %s168_s29 }
  0x22   : > { %p936_p1 = scmp.ne.s32.totalorder %s168_s29, %s935_s9  ;;  %p944_p6 = scmp.lt.s32.totalorder %s935_s9, %s935_s9 }
  0x24   : > { %p938_p13 = pnand %p936_p1, %p900_p12  ;;  %p945_p5 = por %p944_p6, %p943_p2 }
  0x26   : > { %p939_p0 = pneg %p938_p13 }
  0x28   : > { %p946_p10 = pnand %p945_p5, %p939_p0 }
  0x2a   : > { %949 = shalt.err (!%p946_p10)
}
  0x2b   : > { %s1052_s10 = smov 256   ;;  %s1053_s11 = smov 16  }
  0x2c   : > { %833 = dma.hbm_to_vmem [thread:$0]  (!%p1144_p11), %s1353_s2, 512, %s168_s29, [#allocation9], %s1052_s10, %s1052_s10, %s1053_s11  }
  0x2d   : > { %s1167_s14 = sadd.s32 1, %s1046_s20   ;;  %s29_s16 = sadd.s32 1, %s1042_s19 }
  0x2e   : > { %s26_s15 = ssub.s32 %s1046_s20, %s1167_s14  ;;  %p36_p2 = scmp.ne.s32.totalorder %s1042_s19, %s1038_s18 }
  0x2f   : > { %p27_p1 = scmp.eq.s32.totalorder %s26_s15, 0  ;;  %p37_p6 = scmp.eq.s32.totalorder %s1046_s20, 0 }
  0x30   : > { %p1364_p3 = scmp.eq.s32.totalorder %s1116_s3, 1  ;;  %p844_p9 = scmp.lt.s32.totalorder %s1046_s20, 2 }
  0x31   : > { %s1176_s21 = scalar_select %p27_p1, %s1042_s19, %s29_s16  }
  0x32   : > { %p38_p12 = por %p37_p6, %p36_p2  ;;  %p1180_p7 = por %p1364_p3, %p36_p2 }
  0x33   : > { %s184_s26 = sand.u32 1, %s1042_s19   ;;  %s803_s28 = sshll.u32 %s1046_s20, 7 }
  0x34   : > { %s1365_s25 = scalar_select %p1180_p7, 1, 0 }
  0x35   : > { %s788_s27 = sshll.u32 %s184_s26, 3  ;;  %s1190_s5 = scalar_lea.hbm %s1351_s0, %s803_s28 }
  0x36   : > { %s188_s6 = scalar_lea.vmem [#allocation5], %s788_s27  ;;  %p1192_p11 = pnand %p844_p9, %p38_p12 }
  0x37   : > { %s196_s7 = sshll.u32 %s188_s6, 4  ;;  %s185_s9 = scalar_lea.sflag [#allocation6], %s184_s26  ;;  %s197_s7 = int_to_ptr.vmem [resolvable:$true] %s196_s7 }
  0x38   : > { %s950_s10 = scalar_lea.hbm %s1190_s5, 128  ;;  %p952_p0 = pneg %p1192_p11 }
  0x39   : > { %p951_p13 = scmp.ne.s32.totalorder %s1190_s5, %s950_s10  ;;  %s955_s13 = scalar_lea.hbm %s1351_s0, 256 }
  0x3a   : > { %p956_p1 = scmp.lt.s32.totalorder %s1190_s5, %s1351_s0  ;;  %p957_p2 = scmp.lt.s32.totalorder %s955_s13, %s950_s10 }
  0x3b   : > { %p953_p5 = pnand %p952_p0, %p951_p13 }
  0x3c   : > { %p958_p6 = por %p957_p2, %p956_p1 }
  0x3d   : > { %p954_p10 = pneg %p953_p5 }
  0x3f   : > { %p959_p12 = pnand %p958_p6, %p954_p10 }
  0x41   : > { %962 = shalt.err (!%p959_p12)
}
  0x42   : > { %s963_s27 = scalar_lea.vmem %s197_s7, 128  ;;  %s1054_s26 = smov [#allocation5]  }
  0x43   : > { %p964_p3 = scmp.ne.s32.totalorder %s197_s7, %s963_s27  ;;  %s968_s28 = sshll.u32 %s1054_s26, 4  ;;  %s969_s28 = int_to_ptr.vmem [resolvable:$false] %s968_s28 }
  0x44   : > { %s970_s29 = scalar_lea.vmem %s969_s28, 256  ;;  %p971_p13 = scmp.lt.s32.totalorder %s197_s7, %s969_s28 }
  0x45   : > { %p966_p9 = pnand %p964_p3, %p952_p0  ;;  %p972_p5 = scmp.lt.s32.totalorder %s970_s29, %s963_s27 }
  0x47   : > { %p967_p7 = pneg %p966_p9  ;;  %p973_p4 = por %p972_p5, %p971_p13 }
  0x49   : > { %p974_p8 = pnand %p973_p4, %p967_p7 }
  0x4b   : > { %977 = shalt.err (!%p974_p8)
}
  0x4c   : > { %837 = dma.hbm_to_vmem [thread:$0]  (!%p1192_p11), %s1190_s5, 128, %s197_s7, %s185_s9  }
  0x4d   : > { %p1367_p10 = scmp.ne.s32.totalorder %s1362_s24, 0 }
  0x4e   : > { %s1213_s30 = sand.u32 (!%p1367_p10), 1, %s1038_s18   ;;  %p1368_p0 = scmp.ne.s32.totalorder (!%p1367_p10), %s1360_s22, 0 }
  0x4f   : > { %205 = sbr.rel (%p1367_p10) target bundleno = 603 (0x25b), region = 36  ;;  %s792_s6 = sshll.u32 (!%p1367_p10), %s1213_s30, 3 }
  0x50   : > { %s208_s10 = scalar_lea.sflag (!%p1367_p10), [#allocation6], %s1213_s30  ;;  %s1217_s11 = scalar_lea.vmem (!%p1367_p10), [#allocation5], %s792_s6 }
  0x54   : > { %1021 = dma.done.wait (%p1368_p0), %s208_s10, 128  }
  0x55   : > { %1023 = vsyncadd (%p1368_p0), %s208_s10, 4294967168  ;;  %p1369_p4 = scmp.eq.s32.totalorder %s1116_s3, 0 }
  0x57   : > { %1025 = dma.done.wait (%p1369_p4), [#allocation9], 768   ;;  %p1370_p8 = pmov %p1369_p4 }
  0x58   : > { %v254_v0 = vlaneseq  ;;  %v1055_v1 = vmov 0.0   ;;  %v529_v5 = vld [vmem:[#allocation10 + $0x10] ss:$8 sm:$0x3]  ;;  %v1228_v24 = vld [vmem:[%s1217_s11] sm:$0xff]  ;;  %s1056_s22 = smov 17  }
  0x59   : > { %1027 = vsyncadd (%p1370_p8), [#allocation9], 4294966528  ;;  %245 = vst [vmem:[#allocation2 + $0xc] sm:$0xf] %v1055_v1  ;;  %646 = vmatprep.mubr.f32.mxu0 %v1055_v1  ;;  %652 = vmatprep.mubr.f32.mxu1 %v1055_v1  ;;  %s1057_s24 = smov 16   ;;  %s1058_s5 = smov 15  }
  0x5a   : > { %244 = vst [vmem:[#allocation2] sm:$0xf] %v1055_v1  ;;  %v255_v2 = vshrl.u32 %v254_v0, 7  ;;  %v491_v6 = vld [vmem:[#allocation10 + $0x7] ss:$8 sm:$0x3] }
  0x5b   : > { %v454_v11 = vld [vmem:[#allocation10 + $0x6] ss:$8 sm:$0x3]  ;;  %v416_v12 = vld [vmem:[#allocation10 + $0x5] ss:$8 sm:$0x3] }
  0x5c   : > { %v256_v3 = vsub.s32 0, %v255_v2  ;;  %v260_v4 = vsub.s32 1, %v255_v2  ;;  %v331_v17 = vld [vmem:[#allocation10 + $0x2] ss:$8 sm:$0x3]  ;;  %249 = vst [vmem:[#allocation2 + $0x4] sm:$0xff] %v1228_v24 }
  0x5d   : > { %v370_v18 = vld [vmem:[#allocation10 + $0x3] ss:$8 sm:$0x3]  ;;  %v252_v28 = vld [vmem:[#allocation10] ss:$8 sm:$0x3] }
  0x5e   : > { %v534_v7 = vrot.slane %v529_v5, %v256_v3  ;;  %v538_v8 = vrot.slane %v529_v5, %v260_v4  ;;  %v496_v9 = vrot.slane %v491_v6, %v256_v3  ;;  %v500_v10 = vrot.slane %v491_v6, %v260_v4  ;;  %411 = vst [vmem:[#allocation3 + $0x48] sm:$0xf] %v1228_v24  ;;  %v291_v29 = vld [vmem:[#allocation10 + $0x1] ss:$8 sm:$0x3]  ;;  %s1059_s7 = smov 1  }
  0x5f   : > { %v459_v13 = vrot.slane %v454_v11, %v256_v3  ;;  %v463_v14 = vrot.slane %v454_v11, %v260_v4  ;;  %v421_v15 = vrot.slane %v416_v12, %v256_v3  ;;  %v425_v16 = vrot.slane %v416_v12, %v260_v4  ;;  %s1060_s8 = smov 113   ;;  %s1061_s9 = smov 127  }
  0x60   : > { %v539_v19 = vcombine.low %v534_v7, %v538_v8  ;;  %v501_v20 = vcombine.low %v496_v9, %v500_v10  ;;  %v336_v22 = vrot.slane %v331_v17, %v256_v3  ;;  %v340_v23 = vrot.slane %v331_v17, %v260_v4  ;;  %s1062_s12 = smov 111   ;;  %s1063_s13 = smov 112   ;;  %v527_v39 = vld [vmem:[#allocation2 + $0xc] sm:$0xf] }
  0x61   : > { %v464_v21 = vcombine.low %v459_v13, %v463_v14  ;;  %v426_v25 = vcombine.low %v421_v15, %v425_v16  ;;  %v375_v26 = vrot.slane %v370_v18, %v256_v3  ;;  %v379_v27 = vrot.slane %v370_v18, %v260_v4  ;;  %v452_v44 = vld [vmem:[#allocation2 + $0xc] sm:$0xf]  ;;  %s659_s15 = sld [smem:[#allocation4]]  ;;  %s795_s16 = sshll.u32 %s1213_s30, 5 }
  0x62   : > { %540 = vrot.lane.b32.xlu0 %v539_v19, %s1056_s22  ;;  %502 = vrot.lane.b32.xlu1 %v501_v20, %s1057_s24  ;;  %v341_v30 = vcombine.low %v336_v22, %v340_v23  ;;  %v257_v31 = vrot.slane %v252_v28, %v256_v3  ;;  %v261_v32 = vrot.slane %v252_v28, %v260_v4  ;;  %vm281_vm0 = vcmask 138240   ;;  %v489_v7 = vld [vmem:[#allocation2 + $0xc] sm:$0xf]  ;;  %s243_s27 = scalar_lea.vmem [#allocation11], %s795_s16  ;;  %s804_s28 = sshll.u32 %s1116_s3, 9 }
  0x63   : > { %v380_v33 = vcombine.low %v375_v26, %v379_v27  ;;  %v296_v34 = vrot.slane %v291_v29, %v256_v3  ;;  %v300_v35 = vrot.slane %v291_v29, %v260_v4  ;;  %v329_v50 = vld [vmem:[#allocation2 + $0x8] sm:$0xf]  ;;  %vm384_vm1 = vcmask 1039360   ;;  %v1244_v57 = vld [vmem:[#allocation2] sm:$0xff]  ;;  %v414_v14 = vld [vmem:[#allocation2 + $0xc] sm:$0xf]  ;;  %s1307_s10 = scalar_lea.hbm %s1355_s4, %s804_s28 }
  0x64   : > { %v262_v36 = vcombine.low %v257_v31, %v261_v32  ;;  %v251_v60 = vld [vmem:[#allocation2 + $0x8] sm:$0xf]  ;;  %vm321_vm2 = vcmask 130048   ;;  %vm345_vm3 = vcmask 924672   ;;  %vm360_vm4 = vcmask 121856   ;;  %s691_s26 = sshll.u32 %s243_s27, 4  ;;  %s1302_s26 = int_to_ptr.vmem [resolvable:$true] %s691_s26 }
  0x65   : > { %v301_v37 = vcombine.low %v296_v34, %v300_v35  ;;  %vm305_vm5 = vcmask 916480   ;;  %v409_v6 = vcombine.high %v1228_v24, %v1228_v24  ;;  %vm400_vm6 = vcmask 7168   ;;  %v368_v16 = vld [vmem:[#allocation2 + $0x8] sm:$0xf]  ;;  %s678_s3 = scalar_lea.sflag [#allocation7], %s1213_s30  ;;  %s978_s11 = scalar_lea.vmem %s1302_s26, 512 }
  0x66   : > { %465 = vrot.lane.b32.xlu0 %v464_v21, %s1058_s5  ;;  %427 = vrot.lane.b32.xlu1 %v426_v25, %s1059_s7  ;;  %v1064_v17 = vmov 1.0   ;;  %v289_v22 = vld [vmem:[#allocation2 + $0x8] sm:$0xf]  ;;  %vm266_vm7 = vcmask 908288   ;;  %vm575_vm8 = vcmask 326656   ;;  %p979_p7 = scmp.ne.s32.totalorder %s1302_s26, %s978_s11  ;;  %p1371_p11 = scmp.ne.s32.totalorder %s1365_s25, 0 }
  0x67   : > { %412 = vst [vmem:[#allocation3 + $0x10] sm:$0xf] %v409_v6  ;;  %247 = vst [vmem:[#allocation3 + $0x40] sm:$0xf0] %v1064_v17 }
  0x68   : > { %246 = vst [vmem:[#allocation3 + $0x20] sm:$0xf0] %v1064_v17  ;;  %p980_p1 = pnand %p979_p7, %p1371_p11 }
  0x6a   : > { %342 = vrot.lane.b32.xlu0 %v341_v30, %s1060_s8  ;;  %381 = vrot.lane.b32.xlu1 %v380_v33, %s1061_s9  ;;  %p981_p2 = pneg %p980_p1 }
  0x6e   : > { %263 = vrot.lane.b32.xlu0 %v262_v36, %s1062_s12  ;;  %302 = vrot.lane.b32.xlu1 %v301_v37, %s1063_s13 }
  0xd4   : > { %v541_v38 = vpop.permute.xlu0 %540  ;;  %v503_v40 = vpop.permute.xlu1 %502 }
  0xd5   : > { %v542_v41 = vrot.slane %v541_v38, 4  ;;  %v504_v56 = vrot.slane %v503_v40, 4 }
  0xd7   : > { %v547_v42 = vmul.f32 %v542_v41, %v527_v39  ;;  %v543_v48 = vsel %vm281_vm0, %v542_v41, %v541_v38  ;;  %v505_v1 = vsel %vm321_vm2, %v504_v56, %v503_v40  ;;  %v509_v11 = vmul.f32 %v504_v56, %v489_v7 }
  0xd8   : > { %v466_v43 = vpop.permute.xlu0 %465  ;;  %v428_v45 = vpop.permute.xlu1 %427  ;;  %v546_v54 = vmul.f32 %v543_v48, %v1228_v24  ;;  %v508_v4 = vmul.f32 %v505_v1, %v1228_v24 }
  0xd9   : > { %v467_v46 = vrot.slane %v466_v43, 4  ;;  %555 = vrot.lane.b32.xlu1 %v547_v42, %s1062_s12  ;;  %v429_v9 = vrot.slane %v428_v45, 4  ;;  %v513_v21 = vcombine.low %v509_v11, %v509_v11 }
  0xda   : > { %v550_v28 = vcombine.high %v546_v54, %v546_v54  ;;  %v512_v29 = vcombine.low %v508_v4, %v508_v4 }
  0xdb   : > { %v472_v47 = vmul.f32 %v467_v46, %v452_v44  ;;  %v468_v8 = vsel %vm360_vm4, %v467_v46, %v466_v43  ;;  %v430_v15 = vsel %vm400_vm6, %v429_v9, %v428_v45  ;;  %v434_v19 = vmul.f32 %v429_v9, %v414_v14 }
  0xdc   : > { %v343_v49 = vpop.permute.xlu0 %342  ;;  %v382_v51 = vpop.permute.xlu1 %381  ;;  %v471_v12 = vmul.f32 %v468_v8, %v1228_v24  ;;  %v433_v18 = vmul.f32 %v430_v15, %v1228_v24 }
  0xdd   : > { %v344_v52 = vrot.slane %v343_v49, 4  ;;  %v383_v53 = vrot.slane %v382_v51, 4  ;;  %480 = vrot.lane.b32.xlu0 %v472_v47, %s1060_s8  ;;  %v438_v26 = vcombine.low %v434_v19, %v434_v19 }
  0xde   : > { %v475_v24 = vcombine.high %v471_v12, %v471_v12  ;;  %v437_v32 = vcombine.low %v433_v18, %v433_v18 }
  0xdf   : > { %v350_v55 = vmul.f32 %v344_v52, %v329_v50  ;;  %v385_v58 = vsel %vm384_vm1, %v383_v53, %v382_v51  ;;  %v346_v2 = vsel %vm345_vm3, %v344_v52, %v343_v49  ;;  %v389_v20 = vmul.f32 %v383_v53, %v368_v16 }
  0xe0   : > { %v264_v59 = vpop.permute.xlu0 %263  ;;  %v303_v62 = vpop.permute.xlu1 %302  ;;  %v388_v63 = vmul.f32 %v385_v58, %v1244_v57  ;;  %v349_v5 = vmul.f32 %v346_v2, %v1244_v57 }
  0xe1   : > { %v265_v61 = vrot.slane %v264_v59, 4  ;;  %358 = vrot.lane.b32.xlu1 %v350_v55, %s1058_s5  ;;  %551 = vrot.lane.b32.xlu0 %v546_v54, %s1062_s12  ;;  %v304_v3 = vrot.slane %v303_v62, 4  ;;  %v393_v25 = vcombine.low %v389_v20, %v389_v20 }
  0xe2   : > { %v353_v33 = vcombine.high %v349_v5, %v349_v5  ;;  %v392_v34 = vcombine.low %v388_v63, %v388_v63 }
  0xe3   : > { %v271_v0 = vmul.f32 %v265_v61, %v251_v60  ;;  %v306_v10 = vsel %vm305_vm5, %v304_v3, %v303_v62  ;;  %v310_v23 = vmul.f32 %v304_v3, %v289_v22  ;;  %v267_v30 = vsel %vm266_vm7, %v265_v61, %v264_v59  ;;  %v563_v22 = vld [vmem:[#allocation8] sm:$0xff] }
  0xe4   : > { %v309_v13 = vmul.f32 %v1244_v57, %v306_v10  ;;  %v270_v31 = vmul.f32 %v1244_v57, %v267_v30 }
  0xe5   : > { %279 = vrot.lane.b32.xlu1 %v271_v0, %s1056_s22  ;;  %396 = vrot.lane.b32.xlu0 %v388_v63, %s1059_s7  ;;  %v314_v27 = vcombine.low %v310_v23, %v310_v23  ;;  %v564_v23 = vld [vmem:[#allocation8 + $0x8] sm:$0xff] }
  0xe6   : > { %v274_v35 = vcombine.high %v270_v31, %v270_v31  ;;  %v313_v36 = vcombine.low %v309_v13, %v309_v13 }
  0xe9   : > { %516 = vrot.lane.b32.xlu1 %v508_v4, %s1063_s13  ;;  %354 = vrot.lane.b32.xlu0 %v349_v5, %s1058_s5 }
  0xed   : > { %476 = vrot.lane.b32.xlu1 %v471_v12, %s1060_s8  ;;  %317 = vrot.lane.b32.xlu0 %v309_v13, %s1057_s24 }
  0xf1   : > { %441 = vrot.lane.b32.xlu1 %v433_v18, %s1061_s9  ;;  %518 = vrot.lane.b32.xlu0 %v513_v21, %s1063_s13 }
  0xf5   : > { %398 = vrot.lane.b32.xlu1 %v393_v25, %s1059_s7  ;;  %443 = vrot.lane.b32.xlu0 %v438_v26, %s1061_s9  ;;  %v664_v26 = vstv %s659_s15 }
  0xf9   : > { %319 = vrot.lane.b32.xlu1 %v314_v27, %s1057_s24  ;;  %553 = vrot.lane.b32.xlu0 %v550_v28, %s1062_s12 }
  0xfd   : > { %478 = vrot.lane.b32.xlu1 %v475_v24, %s1060_s8  ;;  %514 = vrot.lane.b32.xlu0 %v512_v29, %s1063_s13 }
 0x101   : > { %439 = vrot.lane.b32.xlu1 %v437_v32, %s1061_s9  ;;  %356 = vrot.lane.b32.xlu0 %v353_v33, %s1058_s5 }
 0x105   : > { %394 = vrot.lane.b32.xlu1 %v392_v34, %s1059_s7  ;;  %277 = vrot.lane.b32.xlu0 %v274_v35, %s1056_s22 }
 0x109   : > { %315 = vrot.lane.b32.xlu1 %v313_v36, %s1057_s24  ;;  %275 = vrot.lane.b32.xlu0 %v270_v31, %s1056_s22  ;;  %s1065_s22 = smov [#allocation11]  }
 0x10a   : > { %s982_s5 = sshll.u32 %s1065_s22, 4  ;;  %s983_s5 = int_to_ptr.vmem [resolvable:$false] %s982_s5 }
 0x10b   : > { %s984_s7 = scalar_lea.vmem %s983_s5, 1024  ;;  %p985_p6 = scmp.lt.s32.totalorder %s1302_s26, %s983_s5 }
 0x10c   : > { %p986_p12 = scmp.lt.s32.totalorder %s984_s7, %s978_s11 }
 0x10e   : > { %p987_p3 = por %p986_p12, %p985_p6 }
 0x110   : > { %p988_p9 = pnand %p987_p3, %p981_p2 }
 0x14b   : > { %v556_v37 = vpop.permute.xlu1 %555 }
 0x14f   : > { %v481_v38 = vpop.permute.xlu0 %480 }
 0x153   : > { %v359_v39 = vpop.permute.xlu1 %358  ;;  %v552_v40 = vpop.permute.xlu0 %551 }
 0x157   : > { %v280_v41 = vpop.permute.xlu1 %279  ;;  %v397_v42 = vpop.permute.xlu0 %396 }
 0x15b   : > { %v517_v43 = vpop.permute.xlu1 %516  ;;  %v355_v44 = vpop.permute.xlu0 %354 }
 0x15f   : > { %v477_v45 = vpop.permute.xlu1 %476  ;;  %v318_v46 = vpop.permute.xlu0 %317 }
 0x163   : > { %v442_v47 = vpop.permute.xlu1 %441  ;;  %v519_v48 = vpop.permute.xlu0 %518 }
 0x164   : > { %v521_v49 = vsel %vm305_vm5, %v517_v43, %v519_v48 }
 0x165   : > { %525 = vst [vmem:[#allocation3 + $0x28] sm:$0xf0] %v521_v49 }
 0x167   : > { %v399_v50 = vpop.permute.xlu1 %398  ;;  %v444_v51 = vpop.permute.xlu0 %443 }
 0x168   : > { %v402_v52 = vsel %vm400_vm6, %v397_v42, %v399_v50  ;;  %v446_v53 = vsel %vm384_vm1, %v442_v47, %v444_v51 }
 0x169   : > { %406 = vst [vmem:[#allocation3 + $0x18] sm:$0xf0] %v402_v52  ;;  %450 = vst [vmem:[#allocation3 + $0x10] sm:$0xf0] %v446_v53 }
 0x16b   : > { %v320_v54 = vpop.permute.xlu1 %319  ;;  %v554_v55 = vpop.permute.xlu0 %553 }
 0x16c   : > { %v323_v56 = vsel %vm321_vm2, %v318_v46, %v320_v54  ;;  %v557_v57 = vsel %vm266_vm7, %v552_v40, %v554_v55  ;;  %v558_v58 = vsel %vm266_vm7, %v554_v55, %v556_v37 }
 0x16d   : > { %327 = vst [vmem:[#allocation3] sm:$0xf0] %v323_v56  ;;  %561 = vst [vmem:[#allocation3 + $0x20] sm:$0xf] %v557_v57 }
 0x16e   : > { %562 = vst [vmem:[#allocation3 + $0x40] sm:$0xf] %v558_v58 }
 0x16f   : > { %v479_v59 = vpop.permute.xlu1 %478  ;;  %v515_v60 = vpop.permute.xlu0 %514 }
 0x170   : > { %v482_v61 = vsel %vm345_vm3, %v477_v45, %v479_v59  ;;  %v483_v62 = vsel %vm345_vm3, %v479_v59, %v481_v38  ;;  %v520_v63 = vsel %vm305_vm5, %v515_v60, %v517_v43  ;;  %v570_v13 = vld [vmem:[#allocation3 + $0x10] sm:$0xff] }
 0x171   : > { %486 = vst [vmem:[#allocation3 + $0x30] sm:$0xf] %v482_v61  ;;  %487 = vst [vmem:[#allocation3 + $0x28] sm:$0xf] %v483_v62 }
 0x172   : > { %524 = vst [vmem:[#allocation3 + $0x30] sm:$0xf0] %v520_v63 }
 0x173   : > { %v440_v0 = vpop.permute.xlu1 %439  ;;  %v357_v1 = vpop.permute.xlu0 %356 }
 0x174   : > { %v445_v2 = vsel %vm384_vm1, %v440_v0, %v442_v47  ;;  %v361_v3 = vsel %vm360_vm4, %v355_v44, %v357_v1  ;;  %v362_v4 = vsel %vm360_vm4, %v357_v1, %v359_v39  ;;  %v573_v6 = vld [vmem:[#allocation3 + $0x20] sm:$0xff] }
 0x175   : > { %v574_v5 = vld [vmem:[#allocation3 + $0x40] sm:$0xff]  ;;  %449 = vst [vmem:[#allocation3 + $0x48] sm:$0xf0] %v445_v2  ;;  %365 = vst [vmem:[#allocation3 + $0x38] sm:$0xf] %v361_v3 }
 0x176   : > { %366 = vst [vmem:[#allocation3 + $0x18] sm:$0xf] %v362_v4  ;;  %604 = vmatprep.subr.mxu0 %v574_v5  ;;  %805 = vmatprep.subr.mxu1 %v574_v5 }
 0x177   : > { %605 = vmatpush1.msra.mxu0 %v573_v6  ;;  %810 = vmatpush1.msra.mxu1 %v573_v6  ;;  %v395_v7 = vpop.permute.xlu1 %394  ;;  %v278_v8 = vpop.permute.xlu0 %277 }
 0x178   : > { %v401_v9 = vsel %vm400_vm6, %v395_v7, %v397_v42  ;;  %v283_v10 = vsel %vm281_vm0, %v278_v8, %v280_v41  ;;  %v572_v11 = vld [vmem:[#allocation3 + $0x28] sm:$0xff] }
 0x179   : > { %v571_v12 = vld [vmem:[#allocation3 + $0x30] sm:$0xff]  ;;  %405 = vst [vmem:[#allocation3 + $0x38] sm:$0xf0] %v401_v9  ;;  %287 = vst [vmem:[#allocation3] sm:$0xf] %v283_v10  ;;  %606 = vmatprep.subr.mxu0 %v572_v11  ;;  %806 = vmatprep.subr.mxu1 %v572_v11 }
 0x17a   : > { %607 = vmatpush1.msra.mxu0 %v571_v12  ;;  %811 = vmatpush1.msra.mxu1 %v571_v12 }
 0x17b   : > { %608 = vmatprep.subr.mxu0 %v570_v13  ;;  %807 = vmatprep.subr.mxu1 %v570_v13  ;;  %v316_v14 = vpop.permute.xlu1 %315  ;;  %v276_v15 = vpop.permute.xlu0 %275 }
 0x17c   : > { %v322_v16 = vsel %vm321_vm2, %v316_v14, %v318_v46  ;;  %v282_v17 = vsel %vm281_vm0, %v276_v15, %v278_v8  ;;  %v569_v18 = vld [vmem:[#allocation3 + $0x48] sm:$0xff] }
 0x17d   : > { %v568_v19 = vld [vmem:[#allocation3 + $0x18] sm:$0xff]  ;;  %326 = vst [vmem:[#allocation3 + $0x8] sm:$0xf0] %v322_v16  ;;  %286 = vst [vmem:[#allocation3 + $0x8] sm:$0xf] %v282_v17  ;;  %609 = vmatpush1.msra.mxu0 %v569_v18  ;;  %812 = vmatpush1.msra.mxu1 %v569_v18 }
 0x17e   : > { %610 = vmatprep.subr.mxu0 %v568_v19  ;;  %808 = vmatprep.subr.mxu1 %v568_v19 }
 0x180   : > { %v567_v20 = vld [vmem:[#allocation3 + $0x38] sm:$0xff]  ;;  %v566_v21 = vld [vmem:[#allocation3] sm:$0xff] }
 0x181   : > { %611 = vmatpush1.msra.mxu0 %v567_v20  ;;  %813 = vmatpush1.msra.mxu1 %v567_v20 }
 0x182   : > { %612 = vmatprep.subr.mxu0 %v566_v21  ;;  %809 = vmatprep.subr.mxu1 %v566_v21 }
 0x184   : > { %v565_v25 = vld [vmem:[#allocation3 + $0x8] sm:$0xff] }
 0x185   : > { %613 = vmatpush1.msra.mxu0 %v565_v25  ;;  %814 = vmatpush1.msra.mxu1 %v565_v25 }
 0x186   : > { %796 = vmatmul.mubr.msk.f32.vlgmr.msra.gmra.mxu0 %vm575_vm8, %v563_v22  ;;  %797 = vmatmul.mubr.msk.f32.vlgmr.msra.gmra.mxu1 %vm575_vm8, %v564_v23 }
 0x246   : > { %v648_v27 = vpop.f32.mrf.mxu0  ;;  %v654_v28 = vpop.f32.mrf.mxu1 }
 0x247   : > { %vm660_vm9 = vcmp.ge.f32.partialorder %v648_v27, 0.0  ;;  %v665_v24 = vmul.f32 %v664_v26, %v648_v27  ;;  %vm662_vm10 = vcmp.ge.f32.partialorder %v654_v28, 0.0  ;;  %v667_v29 = vmul.f32 %v664_v26, %v654_v28 }
 0x248   : > { %v650_v30 = vpop.f32.mrf.mxu0  ;;  %v656_v31 = vpop.f32.mrf.mxu1 }
 0x249   : > { %v669_v32 = vsel %vm660_vm9, %v648_v27, %v665_v24  ;;  %v671_v33 = vsel %vm662_vm10, %v654_v28, %v667_v29  ;;  %vm661_vm11 = vcmp.ge.f32.partialorder %v650_v30, 0.0  ;;  %v666_v34 = vmul.f32 %v664_v26, %v650_v30 }
 0x24a   : > { %673 = vst [vmem:[%s243_s27] sm:$0xff] %v669_v32  ;;  %675 = vst [vmem:[%s243_s27 + $0x10] sm:$0xff] %v671_v33  ;;  %vm663_vm12 = vcmp.ge.f32.partialorder %v656_v31, 0.0  ;;  %v668_v35 = vmul.f32 %v664_v26, %v656_v31 }
 0x24b   : > { %v670_v36 = vsel %vm661_vm11, %v650_v30, %v666_v34 }
 0x24c   : > { %674 = vst [vmem:[%s243_s27 + $0x8] sm:$0xff] %v670_v36  ;;  %v672_v37 = vsel %vm663_vm12, %v656_v31, %v668_v35 }
 0x24d   : > { %676 = vst [vmem:[%s243_s27 + $0x18] sm:$0xff] %v672_v37 }
 0x24e   : > { %991 = shalt.err (!%p988_p9)
}
 0x24f   : > { %s992_s8 = scalar_lea.hbm %s1307_s10, 512  ;;  %s996_s13 = scalar_lea.hbm %s1355_s4, 1024 }
 0x250   : > { %p993_p13 = scmp.ne.s32.totalorder %s1307_s10, %s992_s8  ;;  %p997_p0 = scmp.lt.s32.totalorder %s1307_s10, %s1355_s4 }
 0x251   : > { %p998_p4 = scmp.lt.s32.totalorder %s996_s13, %s992_s8 }
 0x252   : > { %p994_p5 = pnand %p993_p13, %p1371_p11 }
 0x253   : > { %p999_p8 = por %p998_p4, %p997_p0 }
 0x254   : > { %p995_p10 = pneg %p994_p5 }
 0x256   : > { %p1000_p7 = pnand %p999_p8, %p995_p10 }
 0x258   : > { %1003 = shalt.err (!%p1000_p7)
}
 0x259   : > { %s1066_s27 = smov 256  }
 0x25a   : > { %825 = dma.vmem_to_hbm [thread:$0]  (%p1371_p11), %s1302_s26, 512, %s1307_s10, %s678_s3, %s1066_s27, %s1066_s27, %s1057_s24  }
 0x25b PF: > { %s706_s28 = sand.u32 1, %s1034_s17   ;;  %p1372_p1 = scmp.ne.s32.totalorder %s1361_s23, 0 }
 0x25c   : > { %p1373_p2 = scmp.ge.s32.totalorder %s1046_s20, 2  ;;  %s707_s29 = scalar_lea.sflag [#allocation7], %s706_s28 }
 0x25e   : > { %p839_p6 = pnand %p1373_p2, %p1372_p1 }
 0x260   : > { %p840_p12 = pneg %p839_p6 }
 0x262   : > { %1029 = dma.done.wait (%p840_p12), %s707_s29, 512  }
 0x263   : > { %1031 = vsyncadd (%p840_p12), %s707_s29, 4294966784  ;;  %p19_p3 = scmp.ge.s32.totalorder %s1167_s14, 4   ;;  %s1374_s17 = smov %s1038_s18 }
 0x264   : > { %s1375_s18 = smov %s1042_s19  ;;  %s1376_s19 = smov %s1176_s21 }
 0x265   : > { %s1377_s20 = smov %s1167_s14  ;;  %21 = sbr.rel (!%p19_p3) target bundleno = 8 (0x8), region = 96 }
 0x26a   :  { %712 = vsyncpa [#allocation6], 1 }
 0x26b   :  { %714 = vsyncpa [#allocation6 + $0x1], 1 }
 0x26c   :  { %715 = vsyncpa [#allocation9], 1 }
 0x26d   :  { %716 = vsyncpa [#allocation7], 1 }
 0x26e   :  { %718 = vsyncpa [#allocation7 + $0x1], 1 }

</bundles_post_ra>
